<compile_context>
chip_gen: v6e
topology: v6e:2x2x1
jax: 0.10.0
libtpu: 0.0.40
codegen_flags: <defaults>
</compile_context>

<pallas_src>
import functools
import math

import jax
import jax.numpy as jnp
from jax.experimental import pallas as pl
from jax.experimental.pallas import tpu as pltpu


# ----------------------------------------------------------------------------
# In-kernel helpers (traced inside the Pallas kernel)
# ----------------------------------------------------------------------------

def _layernorm(x, g, b):
    mu = jnp.mean(x, axis=-1, keepdims=True)
    var = jnp.mean((x - mu) ** 2, axis=-1, keepdims=True)
    return (x - mu) * jax.lax.rsqrt(var + 1e-5) * g + b


def _transformer_block(x3, mask_bl, wq, wk, wv, wo, w1, w2, g1, b1, g2, b2,
                       *, causal):
    """Full-batch transformer layer. x3: (B, L, H) f32 -> (B*L, H) f32."""
    B, L, H = x3.shape
    xf = x3.reshape(B * L, H)

    # Three separate projections: every matmul output starts at lane 0, no
    # cross-lane slicing of a fused (B*L, 3H) result.
    q = jnp.dot(xf, wq, preferred_element_type=jnp.float32).reshape(B, L, H)
    k = jnp.dot(xf, wk, preferred_element_type=jnp.float32).reshape(B, L, H)
    v = jnp.dot(xf, wv, preferred_element_type=jnp.float32).reshape(B, L, H)

    s = jnp.einsum('bqd,bkd->bqk', q, k, preferred_element_type=jnp.float32)
    s = s * (1.0 / math.sqrt(H))
    s = jnp.where(mask_bl[:, None, :] > 0.0, s, -1e9)       # key padding mask
    if causal:
        row = jax.lax.broadcasted_iota(jnp.int32, (L, L), 0)
        col = jax.lax.broadcasted_iota(jnp.int32, (L, L), 1)
        s = jnp.where((col <= row)[None, :, :], s, -1e9)

    m = jnp.max(s, axis=-1, keepdims=True)
    p = jnp.exp(s - m)
    p = p * pl.reciprocal(jnp.sum(p, axis=-1, keepdims=True), approx=True)

    attn = jnp.einsum('bqk,bkd->bqd', p, v, preferred_element_type=jnp.float32)
    attn = jnp.dot(attn.reshape(B * L, H), wo, preferred_element_type=jnp.float32)

    h = _layernorm(xf + attn, g1, b1)
    ff = jnp.dot(h, w1, preferred_element_type=jnp.float32)
    ff = jax.nn.gelu(ff, approximate=True)
    ff = jnp.dot(ff, w2, preferred_element_type=jnp.float32)
    return _layernorm(h + ff, g2, b2)                        # (B*L, H)


# ----------------------------------------------------------------------------
# The single fused kernel
# ----------------------------------------------------------------------------

def _lora_vae_kernel(
        enc_ids_ref, dec_ids_ref, mask_ref, eos_ref, eps_ref,
        tok_emb_ref, pos_emb_ref,
        e_wq_ref, e_wk_ref, e_wv_ref, e_wo_ref, e_w1_ref, e_w2_ref,
        e_g1_ref, e_b1_ref, e_g2_ref, e_b2_ref,
        d_wq_ref, d_wk_ref, d_wv_ref, d_wo_ref, d_w1_ref, d_w2_ref,
        d_g1_ref, d_b1_ref, d_g2_ref, d_b2_ref,
        l_a_ref, l_w0mu_ref, l_w0lv_ref, l_bmu_ref, l_blv_ref,
        wz_ref, wlog_ref,
        kl_ref, recon_ref, *, scaling):
    tok_emb = tok_emb_ref[...]                               # (V, H)
    pos_emb = pos_emb_ref[...]                               # (L, H)
    mask = mask_ref[...]                                     # (B, L) f32
    V, H = tok_emb.shape
    L = pos_emb.shape[0]
    B = mask.shape[0]
    N = B * L

    # --- embeddings via one-hot matmuls (replaces XLA gathers; V == 128) ---
    col_v = jax.lax.broadcasted_iota(jnp.int32, (N, V), 1)
    enc_onehot = (col_v == enc_ids_ref[...]).astype(jnp.float32)   # (N, V)
    dec_onehot = (col_v == dec_ids_ref[...]).astype(jnp.float32)   # (N, V)

    enc_x = jnp.dot(enc_onehot, tok_emb, preferred_element_type=jnp.float32)
    enc_x = enc_x.reshape(B, L, H) + pos_emb[None, :, :]
    dec_x = jnp.dot(dec_onehot, tok_emb, preferred_element_type=jnp.float32)
    dec_x = dec_x.reshape(B, L, H) + pos_emb[None, :, :]

    # --- encoder layer + eos pooling ---
    enc_out = _transformer_block(
        enc_x, mask,
        e_wq_ref[...], e_wk_ref[...], e_wv_ref[...], e_wo_ref[...],
        e_w1_ref[...], e_w2_ref[...],
        e_g1_ref[...], e_b1_ref[...], e_g2_ref[...], e_b2_ref[...],
        causal=False)                                        # (N, H)
    pool = jnp.sum(enc_out.reshape(B, L, H) * eos_ref[...][:, :, None],
                   axis=1)                                   # (B, H)

    # --- LoRA linear (chained, no materialized W_eff), reparam, KL ---
    pa = jnp.dot(pool, l_a_ref[...], preferred_element_type=jnp.float32)  # (B, r)
    mu = (jnp.dot(pool, l_w0mu_ref[...], preferred_element_type=jnp.float32)
          + scaling * jnp.dot(pa, l_bmu_ref[...], preferred_element_type=jnp.float32))
    lv = (jnp.dot(pool, l_w0lv_ref[...], preferred_element_type=jnp.float32)
          + scaling * jnp.dot(pa, l_blv_ref[...], preferred_element_type=jnp.float32))
    std = jnp.exp(0.5 * lv)
    z = mu + eps_ref[...] * std                              # (B, Z)
    kl_ref[...] = 0.5 * (mu * mu + jnp.exp(lv) - lv - 1.0)

    # --- latent conditioning + causal decoder layer ---
    zc = jnp.dot(z, wz_ref[...], preferred_element_type=jnp.float32)      # (B, H)
    dec_x = dec_x + zc[:, None, :]
    dec_out = _transformer_block(
        dec_x, mask,
        d_wq_ref[...], d_wk_ref[...], d_wv_ref[...], d_wo_ref[...],
        d_w1_ref[...], d_w2_ref[...],
        d_g1_ref[...], d_b1_ref[...], d_g2_ref[...], d_b2_ref[...],
        causal=True)                                         # (N, H)

    # --- logits head + cross-entropy, mean-reduced in-kernel ---
    logits = jnp.dot(dec_out, wlog_ref[...], preferred_element_type=jnp.float32)
    m = jnp.max(logits, axis=-1, keepdims=True)
    lse = jnp.log(jnp.sum(jnp.exp(logits - m), axis=-1, keepdims=True)) + m
    # CE targets are input_ids (as in the reference); reuse the encoder one-hot.
    tgt_logit = jnp.sum(enc_onehot * logits, axis=-1, keepdims=True)      # (N, 1)
    recon_ref[...] = jnp.sum(lse - tgt_logit, axis=0, keepdims=True) * (1.0 / N)


def lora_vae_fused(cfg, params, enc_ids_flat, dec_ids_flat, mask_f32,
                   eos_onehot, eps, pos_emb_l):
    B = mask_f32.shape[0]
    Z = cfg.z_dim
    enc = params["encoder"]
    dec = params["decoder"]
    lo = params["lora"]
    kern = functools.partial(_lora_vae_kernel,
                             scaling=cfg.lora_alpha / cfg.lora_r)
    return pl.pallas_call(
        kern,
        out_shape=(jax.ShapeDtypeStruct((B, Z), jnp.float32),   # kl (B, Z)
                   jax.ShapeDtypeStruct((1, 1), jnp.float32)),  # mean NLL
        out_specs=(pl.BlockSpec(memory_space=pltpu.MemorySpace.VMEM),
                   pl.BlockSpec(memory_space=pltpu.MemorySpace.VMEM)),
    )(enc_ids_flat, dec_ids_flat, mask_f32, eos_onehot, eps,
      params["tok_emb"], pos_emb_l,
      enc["wq"], enc["wk"], enc["wv"], enc["wo"], enc["w1"], enc["w2"],
      enc["g1"], enc["b1"], enc["g2"], enc["b2"],
      dec["wq"], dec["wk"], dec["wv"], dec["wo"], dec["w1"], dec["w2"],
      dec["g1"], dec["b1"], dec["g2"], dec["b2"],
      lo["a_t"], lo["w0_mu"], lo["w0_lv"], lo["b_mu"], lo["b_lv"],
      params["wz"], params["w_logits_t"])


# ----------------------------------------------------------------------------
# Plain-JAX glue (tiny int ops only; fused into one XLA prologue under jit)
# ----------------------------------------------------------------------------

def shift_tokens_right(input_ids, pad_token_id, decoder_start_token_id):
    shifted = jnp.zeros_like(input_ids)
    shifted = shifted.at[:, 1:].set(input_ids[:, :-1])
    shifted = shifted.at[:, 0].set(decoder_start_token_id)
    shifted = jnp.where(shifted == -100, pad_token_id, shifted)
    return shifted


def last_eos_onehot(input_ids, eos_token_id):
    """(B, L) f32 one-hot at the LAST eos position per row."""
    _, L = input_ids.shape
    eos = input_ids == eos_token_id
    pos = jnp.arange(L, dtype=jnp.int32)[None, :]
    last = jnp.max(jnp.where(eos, pos, -1), axis=1, keepdims=True)
    return (pos == last).astype(jnp.float32)


# ----------------------------------------------------------------------------
# Model: config, parameters, forward
# ----------------------------------------------------------------------------

class Cfg:
    vocab_size = 128
    hidden_dim = 32
    ffn_dim = 64
    z_dim = 16
    max_len = 8
    pad_token_id = 1
    eos_token_id = 2
    decoder_start_token_id = 2
    lora_r = 4
    lora_alpha = 8.0
    beta = 0.5
    length_weighted_loss = False


def _layer_params(key, H, F):
    ks = jax.random.split(key, 6)
    n = lambda k, s: (0.02 * jax.random.normal(k, s)).astype(jnp.float32)
    return {
        "wq": n(ks[0], (H, H)), "wk": n(ks[1], (H, H)), "wv": n(ks[2], (H, H)),
        "wo": n(ks[3], (H, H)),
        "w1": n(ks[4], (H, F)), "w2": n(ks[5], (F, H)),
        "g1": jnp.ones((1, H), jnp.float32), "b1": jnp.zeros((1, H), jnp.float32),
        "g2": jnp.ones((1, H), jnp.float32), "b2": jnp.zeros((1, H), jnp.float32),
    }


def init_params(key, cfg):
    ks = jax.random.split(key, 9)
    n = lambda k, s: (0.02 * jax.random.normal(k, s)).astype(jnp.float32)
    H, F, Z, V, r = (cfg.hidden_dim, cfg.ffn_dim, cfg.z_dim,
                     cfg.vocab_size, cfg.lora_r)
    # LoRA linear hidden_dim -> 2*z_dim, no bias, stored (in, out); the mu /
    # logvar halves are pre-split (== torch .chunk(2, -1)) so the kernel never
    # lane-slices a (B, 2Z) result.
    w0 = n(ks[4], (H, 2 * Z))
    lb = n(ks[6], (r, 2 * Z))
    return {
        "tok_emb": n(ks[0], (V, H)),
        "pos_emb": n(ks[1], (cfg.max_len, H)),
        "encoder": _layer_params(ks[2], H, F),
        "decoder": _layer_params(ks[3], H, F),
        "lora": {
            "a_t": n(ks[5], (H, r)),
            "w0_mu": w0[:, :Z], "w0_lv": w0[:, Z:],
            "b_mu": lb[:, :Z], "b_lv": lb[:, Z:],
        },
        "wz": n(ks[7], (Z, H)),          # latent -> hidden conditioning
        "w_logits_t": n(ks[8], (H, V)),  # logits head, stored (in, out)
    }


def lora_vae_forward(cfg, params, input_ids, attention_mask, labels, eps):
    B, L = input_ids.shape

    reconstruction_mask = (labels != cfg.pad_token_id).astype(jnp.float32)
    sent_length = jnp.sum(reconstruction_mask, axis=1)                 # (B,)

    decoder_input_ids = shift_tokens_right(
        input_ids, cfg.pad_token_id, cfg.decoder_start_token_id)
    eos_onehot = last_eos_onehot(input_ids, cfg.eos_token_id)          # (B, L)

    kl_loss, recon = lora_vae_fused(
        cfg, params,
        input_ids.reshape(B * L, 1).astype(jnp.int32),
        decoder_input_ids.reshape(B * L, 1).astype(jnp.int32),
        attention_mask.astype(jnp.float32),
        eos_onehot, eps,
        params["pos_emb"][:L])
    reconstruction_loss = recon[0, 0]

    if cfg.length_weighted_loss:
        # TODO(synk): the PyTorch reference broadcasts (B,) against (B, Z)
        # which errors; use an explicit (B, 1) here so the branch is usable.
        loss = reconstruction_loss / sent_length[:, None] + cfg.beta * kl_loss
    else:
        loss = reconstruction_loss + cfg.beta * kl_loss

    return reconstruction_loss, kl_loss, loss


# ----------------------------------------------------------------------------
if __name__ == "__main__":
    cfg = Cfg()
    B, L = 2, cfg.max_len

    key = jax.random.PRNGKey(0)
    k_param, k_ids, k_eps = jax.random.split(key, 3)

    params = init_params(k_param, cfg)

    input_ids = jax.random.randint(k_ids, (B, L), 3, cfg.vocab_size,
                                   dtype=jnp.int32)
    input_ids = input_ids.at[:, -1].set(cfg.eos_token_id)   # rows end with eos
    attention_mask = jnp.ones((B, L), dtype=jnp.int32)
    labels = input_ids.at[1, 0].set(cfg.pad_token_id)       # some label padding
    eps = jax.random.normal(k_eps, (B, cfg.z_dim), dtype=jnp.float32)

    fwd = jax.jit(functools.partial(lora_vae_forward, cfg))
    recon_loss, kl_loss, loss = fwd(params, input_ids, attention_mask,
                                    labels, eps)

    jax.block_until_ready((recon_loss, kl_loss, loss))
    assert recon_loss.shape == ()
    assert kl_loss.shape == (B, cfg.z_dim)
    assert loss.shape == (B, cfg.z_dim)
    assert bool(jnp.isfinite(recon_loss)) and bool(jnp.all(jnp.isfinite(loss)))
    print("KERNEL_OK")
</pallas_src>

<mosaic_0001>
module attributes {stable_mosaic.version = 11 : i64} {
  func.func @_lora_vae_kernel(%arg0: memref<16x1xi32, #tpu.memory_space<vmem>>, %arg1: memref<16x1xi32, #tpu.memory_space<vmem>>, %arg2: memref<2x8xf32, #tpu.memory_space<vmem>>, %arg3: memref<2x8xf32, #tpu.memory_space<vmem>>, %arg4: memref<2x16xf32, #tpu.memory_space<vmem>>, %arg5: memref<128x32xf32, #tpu.memory_space<vmem>>, %arg6: memref<8x32xf32, #tpu.memory_space<vmem>>, %arg7: memref<32x32xf32, #tpu.memory_space<vmem>>, %arg8: memref<32x32xf32, #tpu.memory_space<vmem>>, %arg9: memref<32x32xf32, #tpu.memory_space<vmem>>, %arg10: memref<32x32xf32, #tpu.memory_space<vmem>>, %arg11: memref<32x64xf32, #tpu.memory_space<vmem>>, %arg12: memref<64x32xf32, #tpu.memory_space<vmem>>, %arg13: memref<1x32xf32, #tpu.memory_space<vmem>>, %arg14: memref<1x32xf32, #tpu.memory_space<vmem>>, %arg15: memref<1x32xf32, #tpu.memory_space<vmem>>, %arg16: memref<1x32xf32, #tpu.memory_space<vmem>>, %arg17: memref<32x32xf32, #tpu.memory_space<vmem>>, %arg18: memref<32x32xf32, #tpu.memory_space<vmem>>, %arg19: memref<32x32xf32, #tpu.memory_space<vmem>>, %arg20: memref<32x32xf32, #tpu.memory_space<vmem>>, %arg21: memref<32x64xf32, #tpu.memory_space<vmem>>, %arg22: memref<64x32xf32, #tpu.memory_space<vmem>>, %arg23: memref<1x32xf32, #tpu.memory_space<vmem>>, %arg24: memref<1x32xf32, #tpu.memory_space<vmem>>, %arg25: memref<1x32xf32, #tpu.memory_space<vmem>>, %arg26: memref<1x32xf32, #tpu.memory_space<vmem>>, %arg27: memref<32x4xf32, #tpu.memory_space<vmem>>, %arg28: memref<32x16xf32, #tpu.memory_space<vmem>>, %arg29: memref<32x16xf32, #tpu.memory_space<vmem>>, %arg30: memref<4x16xf32, #tpu.memory_space<vmem>>, %arg31: memref<4x16xf32, #tpu.memory_space<vmem>>, %arg32: memref<16x32xf32, #tpu.memory_space<vmem>>, %arg33: memref<32x128xf32, #tpu.memory_space<vmem>>, %arg34: memref<2x16xf32, #tpu.memory_space<vmem>>, %arg35: memref<1x1xf32, #tpu.memory_space<vmem>>) attributes {dimension_semantics = [], scalar_prefetch = 0 : i64, scratch_operands = 0 : i64, tpu.core_type = #tpu.core_type<tc>} {
    %c0 = arith.constant 0 : index
    %c0_0 = arith.constant 0 : index
    %0 = vector.load %arg5[%c0, %c0_0] : memref<128x32xf32, #tpu.memory_space<vmem>>, vector<128x32xf32>
    %c0_1 = arith.constant 0 : index
    %c0_2 = arith.constant 0 : index
    %1 = vector.load %arg6[%c0_1, %c0_2] : memref<8x32xf32, #tpu.memory_space<vmem>>, vector<8x32xf32>
    %c0_3 = arith.constant 0 : index
    %c0_4 = arith.constant 0 : index
    %2 = vector.load %arg2[%c0_3, %c0_4] : memref<2x8xf32, #tpu.memory_space<vmem>>, vector<2x8xf32>
    %3 = tpu.iota {dimensions = array<i32: 1>} : vector<16x128xi32>
    %c0_5 = arith.constant 0 : index
    %c0_6 = arith.constant 0 : index
    %4 = vector.load %arg0[%c0_5, %c0_6] : memref<16x1xi32, #tpu.memory_space<vmem>>, vector<16x1xi32>
    %5 = vector.broadcast %4 : vector<16x1xi32> to vector<16x128xi32>
    %6 = arith.cmpi eq, %3, %5 : vector<16x128xi32>
    %7 = arith.extui %6 : vector<16x128xi1> to vector<16x128xi32>
    %8 = arith.sitofp %7 : vector<16x128xi32> to vector<16x128xf32>
    %c0_7 = arith.constant 0 : index
    %c0_8 = arith.constant 0 : index
    %9 = vector.load %arg1[%c0_7, %c0_8] : memref<16x1xi32, #tpu.memory_space<vmem>>, vector<16x1xi32>
    %10 = vector.broadcast %9 : vector<16x1xi32> to vector<16x128xi32>
    %11 = arith.cmpi eq, %3, %10 : vector<16x128xi32>
    %12 = arith.extui %11 : vector<16x128xi1> to vector<16x128xi32>
    %13 = arith.sitofp %12 : vector<16x128xi32> to vector<16x128xf32>
    %cst = arith.constant dense<0.000000e+00> : vector<16x32xf32>
    %14 = tpu.matmul %8, %0, %cst {dimension_numbers = #tpu.dot_dimension_numbers<[1], [0], [0], [1], [0, 0, 1, 1], [], []>} : vector<16x128xf32>, vector<128x32xf32>, vector<16x32xf32> -> vector<16x32xf32>
    %15 = vector.shape_cast %14 : vector<16x32xf32> to vector<2x8x32xf32>
    %16 = vector.shape_cast %1 : vector<8x32xf32> to vector<1x8x32xf32>
    %17 = vector.broadcast %16 : vector<1x8x32xf32> to vector<2x8x32xf32>
    %18 = arith.addf %15, %17 : vector<2x8x32xf32>
    %cst_9 = arith.constant dense<0.000000e+00> : vector<16x32xf32>
    %19 = tpu.matmul %13, %0, %cst_9 {dimension_numbers = #tpu.dot_dimension_numbers<[1], [0], [0], [1], [0, 0, 1, 1], [], []>} : vector<16x128xf32>, vector<128x32xf32>, vector<16x32xf32> -> vector<16x32xf32>
    %20 = vector.shape_cast %19 : vector<16x32xf32> to vector<2x8x32xf32>
    %21 = vector.shape_cast %1 : vector<8x32xf32> to vector<1x8x32xf32>
    %22 = vector.broadcast %21 : vector<1x8x32xf32> to vector<2x8x32xf32>
    %23 = arith.addf %20, %22 : vector<2x8x32xf32>
    %c0_10 = arith.constant 0 : index
    %c0_11 = arith.constant 0 : index
    %24 = vector.load %arg7[%c0_10, %c0_11] : memref<32x32xf32, #tpu.memory_space<vmem>>, vector<32x32xf32>
    %c0_12 = arith.constant 0 : index
    %c0_13 = arith.constant 0 : index
    %25 = vector.load %arg8[%c0_12, %c0_13] : memref<32x32xf32, #tpu.memory_space<vmem>>, vector<32x32xf32>
    %c0_14 = arith.constant 0 : index
    %c0_15 = arith.constant 0 : index
    %26 = vector.load %arg9[%c0_14, %c0_15] : memref<32x32xf32, #tpu.memory_space<vmem>>, vector<32x32xf32>
    %c0_16 = arith.constant 0 : index
    %c0_17 = arith.constant 0 : index
    %27 = vector.load %arg10[%c0_16, %c0_17] : memref<32x32xf32, #tpu.memory_space<vmem>>, vector<32x32xf32>
    %c0_18 = arith.constant 0 : index
    %c0_19 = arith.constant 0 : index
    %28 = vector.load %arg11[%c0_18, %c0_19] : memref<32x64xf32, #tpu.memory_space<vmem>>, vector<32x64xf32>
    %c0_20 = arith.constant 0 : index
    %c0_21 = arith.constant 0 : index
    %29 = vector.load %arg12[%c0_20, %c0_21] : memref<64x32xf32, #tpu.memory_space<vmem>>, vector<64x32xf32>
    %c0_22 = arith.constant 0 : index
    %c0_23 = arith.constant 0 : index
    %30 = vector.load %arg13[%c0_22, %c0_23] : memref<1x32xf32, #tpu.memory_space<vmem>>, vector<1x32xf32>
    %c0_24 = arith.constant 0 : index
    %c0_25 = arith.constant 0 : index
    %31 = vector.load %arg14[%c0_24, %c0_25] : memref<1x32xf32, #tpu.memory_space<vmem>>, vector<1x32xf32>
    %c0_26 = arith.constant 0 : index
    %c0_27 = arith.constant 0 : index
    %32 = vector.load %arg15[%c0_26, %c0_27] : memref<1x32xf32, #tpu.memory_space<vmem>>, vector<1x32xf32>
    %c0_28 = arith.constant 0 : index
    %c0_29 = arith.constant 0 : index
    %33 = vector.load %arg16[%c0_28, %c0_29] : memref<1x32xf32, #tpu.memory_space<vmem>>, vector<1x32xf32>
    %34 = vector.shape_cast %18 : vector<2x8x32xf32> to vector<16x32xf32>
    %cst_30 = arith.constant dense<0.000000e+00> : vector<16x32xf32>
    %35 = tpu.matmul %34, %24, %cst_30 {dimension_numbers = #tpu.dot_dimension_numbers<[1], [0], [0], [1], [0, 0, 1, 1], [], []>} : vector<16x32xf32>, vector<32x32xf32>, vector<16x32xf32> -> vector<16x32xf32>
    %36 = vector.shape_cast %35 : vector<16x32xf32> to vector<2x8x32xf32>
    %cst_31 = arith.constant dense<0.000000e+00> : vector<16x32xf32>
    %37 = tpu.matmul %34, %25, %cst_31 {dimension_numbers = #tpu.dot_dimension_numbers<[1], [0], [0], [1], [0, 0, 1, 1], [], []>} : vector<16x32xf32>, vector<32x32xf32>, vector<16x32xf32> -> vector<16x32xf32>
    %38 = vector.shape_cast %37 : vector<16x32xf32> to vector<2x8x32xf32>
    %cst_32 = arith.constant dense<0.000000e+00> : vector<16x32xf32>
    %39 = tpu.matmul %34, %26, %cst_32 {dimension_numbers = #tpu.dot_dimension_numbers<[1], [0], [0], [1], [0, 0, 1, 1], [], []>} : vector<16x32xf32>, vector<32x32xf32>, vector<16x32xf32> -> vector<16x32xf32>
    %40 = vector.shape_cast %39 : vector<16x32xf32> to vector<2x8x32xf32>
    "tpu.trace_start"() <{level = 10 : i32, message = "bqd,bkd->bqk"}> : () -> ()
    %cst_33 = arith.constant dense<0.000000e+00> : vector<2x8x8xf32>
    %41 = tpu.matmul %36, %38, %cst_33 {dimension_numbers = #tpu.dot_dimension_numbers<[2], [2], [1], [1], [0, 0, 0, 1, 1, 1], [0], [0]>} : vector<2x8x32xf32>, vector<2x8x32xf32>, vector<2x8x8xf32> -> vector<2x8x8xf32>
    "tpu.trace_stop"() : () -> ()
    %cst_34 = arith.constant 0.176776692 : f32
    %42 = vector.broadcast %cst_34 : f32 to vector<2x8x8xf32>
    %43 = arith.mulf %41, %42 : vector<2x8x8xf32>
    %44 = vector.shape_cast %2 : vector<2x8xf32> to vector<2x1x8xf32>
    %cst_35 = arith.constant 0.000000e+00 : f32
    %45 = vector.broadcast %cst_35 : f32 to vector<2x1x8xf32>
    %46 = arith.cmpf ogt, %44, %45 : vector<2x1x8xf32>
    %cst_36 = arith.constant -1.000000e+09 : f32
    %47 = vector.shape_cast %46 : vector<2x1x8xi1> to vector<2x1x8xi1>
    %48 = vector.broadcast %47 : vector<2x1x8xi1> to vector<2x8x8xi1>
    %49 = vector.broadcast %cst_36 : f32 to vector<2x8x8xf32>
    %50 = arith.select %48, %43, %49 : vector<2x8x8xi1>, vector<2x8x8xf32>
    %cst_37 = arith.constant dense<0xFF800000> : vector<2x8xf32>
    %51 = vector.multi_reduction <maximumf>, %50, %cst_37 [2] : vector<2x8x8xf32> to vector<2x8xf32>
    %52 = vector.shape_cast %51 : vector<2x8xf32> to vector<2x8x1xf32>
    %53 = vector.broadcast %52 : vector<2x8x1xf32> to vector<2x8x8xf32>
    %54 = arith.subf %50, %53 : vector<2x8x8xf32>
    %55 = math.exp %54 : vector<2x8x8xf32>
    %cst_38 = arith.constant dense<0.000000e+00> : vector<2x8xf32>
    %56 = vector.multi_reduction <add>, %55, %cst_38 [2] : vector<2x8x8xf32> to vector<2x8xf32>
    %57 = vector.shape_cast %56 : vector<2x8xf32> to vector<2x8x1xf32>
    %58 = tpu.reciprocal %57 {approx = true} : vector<2x8x1xf32> -> vector<2x8x1xf32>
    %59 = vector.broadcast %58 : vector<2x8x1xf32> to vector<2x8x8xf32>
    %60 = arith.mulf %55, %59 : vector<2x8x8xf32>
    "tpu.trace_start"() <{level = 10 : i32, message = "bqk,bkd->bqd"}> : () -> ()
    %cst_39 = arith.constant dense<0.000000e+00> : vector<2x8x32xf32>
    %61 = tpu.matmul %60, %40, %cst_39 {dimension_numbers = #tpu.dot_dimension_numbers<[2], [1], [1], [2], [0, 0, 0, 1, 1, 2], [0], [0]>} : vector<2x8x8xf32>, vector<2x8x32xf32>, vector<2x8x32xf32> -> vector<2x8x32xf32>
    "tpu.trace_stop"() : () -> ()
    %62 = vector.shape_cast %61 : vector<2x8x32xf32> to vector<16x32xf32>
    %cst_40 = arith.constant dense<0.000000e+00> : vector<16x32xf32>
    %63 = tpu.matmul %62, %27, %cst_40 {dimension_numbers = #tpu.dot_dimension_numbers<[1], [0], [0], [1], [0, 0, 1, 1], [], []>} : vector<16x32xf32>, vector<32x32xf32>, vector<16x32xf32> -> vector<16x32xf32>
    %64 = arith.addf %34, %63 : vector<16x32xf32>
    %cst_41 = arith.constant dense<0.000000e+00> : vector<16xf32>
    %65 = vector.multi_reduction <add>, %64, %cst_41 [1] : vector<16x32xf32> to vector<16xf32>
    %66 = vector.shape_cast %65 : vector<16xf32> to vector<16x1xf32>
    %cst_42 = arith.constant 3.200000e+01 : f32
    %67 = vector.broadcast %cst_42 : f32 to vector<16x1xf32>
    %68 = arith.divf %66, %67 : vector<16x1xf32>
    %69 = vector.broadcast %68 : vector<16x1xf32> to vector<16x32xf32>
    %70 = arith.subf %64, %69 : vector<16x32xf32>
    %71 = arith.mulf %70, %70 : vector<16x32xf32>
    %cst_43 = arith.constant dense<0.000000e+00> : vector<16xf32>
    %72 = vector.multi_reduction <add>, %71, %cst_43 [1] : vector<16x32xf32> to vector<16xf32>
    %73 = vector.shape_cast %72 : vector<16xf32> to vector<16x1xf32>
    %cst_44 = arith.constant 3.200000e+01 : f32
    %74 = vector.broadcast %cst_44 : f32 to vector<16x1xf32>
    %75 = arith.divf %73, %74 : vector<16x1xf32>
    %76 = vector.broadcast %68 : vector<16x1xf32> to vector<16x32xf32>
    %77 = arith.subf %64, %76 : vector<16x32xf32>
    %cst_45 = arith.constant 9.99999974E-6 : f32
    %78 = vector.broadcast %cst_45 : f32 to vector<16x1xf32>
    %79 = arith.addf %75, %78 : vector<16x1xf32>
    %80 = math.rsqrt %79 : vector<16x1xf32>
    %81 = vector.broadcast %80 : vector<16x1xf32> to vector<16x32xf32>
    %82 = arith.mulf %77, %81 : vector<16x32xf32>
    %83 = vector.broadcast %30 : vector<1x32xf32> to vector<16x32xf32>
    %84 = arith.mulf %82, %83 : vector<16x32xf32>
    %85 = vector.broadcast %31 : vector<1x32xf32> to vector<16x32xf32>
    %86 = arith.addf %84, %85 : vector<16x32xf32>
    %cst_46 = arith.constant dense<0.000000e+00> : vector<16x64xf32>
    %87 = tpu.matmul %86, %28, %cst_46 {dimension_numbers = #tpu.dot_dimension_numbers<[1], [0], [0], [1], [0, 0, 1, 1], [], []>} : vector<16x32xf32>, vector<32x64xf32>, vector<16x64xf32> -> vector<16x64xf32>
    %88 = arith.mulf %87, %87 : vector<16x64xf32>
    %89 = arith.mulf %87, %88 : vector<16x64xf32>
    %cst_47 = arith.constant 4.471500e-02 : f32
    %90 = vector.broadcast %cst_47 : f32 to vector<16x64xf32>
    %91 = arith.mulf %90, %89 : vector<16x64xf32>
    %92 = arith.addf %87, %91 : vector<16x64xf32>
    %cst_48 = arith.constant 0.797884583 : f32
    %93 = vector.broadcast %cst_48 : f32 to vector<16x64xf32>
    %94 = arith.mulf %93, %92 : vector<16x64xf32>
    %95 = math.tanh %94 : vector<16x64xf32>
    %cst_49 = arith.constant 1.000000e+00 : f32
    %96 = vector.broadcast %cst_49 : f32 to vector<16x64xf32>
    %97 = arith.addf %96, %95 : vector<16x64xf32>
    %cst_50 = arith.constant 5.000000e-01 : f32
    %98 = vector.broadcast %cst_50 : f32 to vector<16x64xf32>
    %99 = arith.mulf %98, %97 : vector<16x64xf32>
    %100 = arith.mulf %87, %99 : vector<16x64xf32>
    %cst_51 = arith.constant dense<0.000000e+00> : vector<16x32xf32>
    %101 = tpu.matmul %100, %29, %cst_51 {dimension_numbers = #tpu.dot_dimension_numbers<[1], [0], [0], [1], [0, 0, 1, 1], [], []>} : vector<16x64xf32>, vector<64x32xf32>, vector<16x32xf32> -> vector<16x32xf32>
    %102 = arith.addf %86, %101 : vector<16x32xf32>
    %cst_52 = arith.constant dense<0.000000e+00> : vector<16xf32>
    %103 = vector.multi_reduction <add>, %102, %cst_52 [1] : vector<16x32xf32> to vector<16xf32>
    %104 = vector.shape_cast %103 : vector<16xf32> to vector<16x1xf32>
    %cst_53 = arith.constant 3.200000e+01 : f32
    %105 = vector.broadcast %cst_53 : f32 to vector<16x1xf32>
    %106 = arith.divf %104, %105 : vector<16x1xf32>
    %107 = vector.broadcast %106 : vector<16x1xf32> to vector<16x32xf32>
    %108 = arith.subf %102, %107 : vector<16x32xf32>
    %109 = arith.mulf %108, %108 : vector<16x32xf32>
    %cst_54 = arith.constant dense<0.000000e+00> : vector<16xf32>
    %110 = vector.multi_reduction <add>, %109, %cst_54 [1] : vector<16x32xf32> to vector<16xf32>
    %111 = vector.shape_cast %110 : vector<16xf32> to vector<16x1xf32>
    %cst_55 = arith.constant 3.200000e+01 : f32
    %112 = vector.broadcast %cst_55 : f32 to vector<16x1xf32>
    %113 = arith.divf %111, %112 : vector<16x1xf32>
    %114 = vector.broadcast %106 : vector<16x1xf32> to vector<16x32xf32>
    %115 = arith.subf %102, %114 : vector<16x32xf32>
    %cst_56 = arith.constant 9.99999974E-6 : f32
    %116 = vector.broadcast %cst_56 : f32 to vector<16x1xf32>
    %117 = arith.addf %113, %116 : vector<16x1xf32>
    %118 = math.rsqrt %117 : vector<16x1xf32>
    %119 = vector.broadcast %118 : vector<16x1xf32> to vector<16x32xf32>
    %120 = arith.mulf %115, %119 : vector<16x32xf32>
    %121 = vector.broadcast %32 : vector<1x32xf32> to vector<16x32xf32>
    %122 = arith.mulf %120, %121 : vector<16x32xf32>
    %123 = vector.broadcast %33 : vector<1x32xf32> to vector<16x32xf32>
    %124 = arith.addf %122, %123 : vector<16x32xf32>
    %125 = vector.shape_cast %124 : vector<16x32xf32> to vector<2x8x32xf32>
    %c0_57 = arith.constant 0 : index
    %c0_58 = arith.constant 0 : index
    %126 = vector.load %arg3[%c0_57, %c0_58] : memref<2x8xf32, #tpu.memory_space<vmem>>, vector<2x8xf32>
    %127 = vector.shape_cast %126 : vector<2x8xf32> to vector<2x8x1xf32>
    %128 = vector.broadcast %127 : vector<2x8x1xf32> to vector<2x8x32xf32>
    %129 = arith.mulf %125, %128 : vector<2x8x32xf32>
    %cst_59 = arith.constant dense<0.000000e+00> : vector<2x32xf32>
    %130 = vector.multi_reduction <add>, %129, %cst_59 [1] : vector<2x8x32xf32> to vector<2x32xf32>
    %c0_60 = arith.constant 0 : index
    %c0_61 = arith.constant 0 : index
    %131 = vector.load %arg27[%c0_60, %c0_61] : memref<32x4xf32, #tpu.memory_space<vmem>>, vector<32x4xf32>
    %cst_62 = arith.constant dense<0.000000e+00> : vector<2x4xf32>
    %132 = tpu.matmul %130, %131, %cst_62 {dimension_numbers = #tpu.dot_dimension_numbers<[1], [0], [0], [1], [0, 0, 1, 1], [], []>} : vector<2x32xf32>, vector<32x4xf32>, vector<2x4xf32> -> vector<2x4xf32>
    %c0_63 = arith.constant 0 : index
    %c0_64 = arith.constant 0 : index
    %133 = vector.load %arg28[%c0_63, %c0_64] : memref<32x16xf32, #tpu.memory_space<vmem>>, vector<32x16xf32>
    %cst_65 = arith.constant dense<0.000000e+00> : vector<2x16xf32>
    %134 = tpu.matmul %130, %133, %cst_65 {dimension_numbers = #tpu.dot_dimension_numbers<[1], [0], [0], [1], [0, 0, 1, 1], [], []>} : vector<2x32xf32>, vector<32x16xf32>, vector<2x16xf32> -> vector<2x16xf32>
    %c0_66 = arith.constant 0 : index
    %c0_67 = arith.constant 0 : index
    %135 = vector.load %arg30[%c0_66, %c0_67] : memref<4x16xf32, #tpu.memory_space<vmem>>, vector<4x16xf32>
    %cst_68 = arith.constant dense<0.000000e+00> : vector<2x16xf32>
    %136 = tpu.matmul %132, %135, %cst_68 {dimension_numbers = #tpu.dot_dimension_numbers<[1], [0], [0], [1], [0, 0, 1, 1], [], []>} : vector<2x4xf32>, vector<4x16xf32>, vector<2x16xf32> -> vector<2x16xf32>
    %cst_69 = arith.constant 2.000000e+00 : f32
    %137 = vector.broadcast %cst_69 : f32 to vector<2x16xf32>
    %138 = arith.mulf %137, %136 : vector<2x16xf32>
    %139 = arith.addf %134, %138 : vector<2x16xf32>
    %c0_70 = arith.constant 0 : index
    %c0_71 = arith.constant 0 : index
    %140 = vector.load %arg29[%c0_70, %c0_71] : memref<32x16xf32, #tpu.memory_space<vmem>>, vector<32x16xf32>
    %cst_72 = arith.constant dense<0.000000e+00> : vector<2x16xf32>
    %141 = tpu.matmul %130, %140, %cst_72 {dimension_numbers = #tpu.dot_dimension_numbers<[1], [0], [0], [1], [0, 0, 1, 1], [], []>} : vector<2x32xf32>, vector<32x16xf32>, vector<2x16xf32> -> vector<2x16xf32>
    %c0_73 = arith.constant 0 : index
    %c0_74 = arith.constant 0 : index
    %142 = vector.load %arg31[%c0_73, %c0_74] : memref<4x16xf32, #tpu.memory_space<vmem>>, vector<4x16xf32>
    %cst_75 = arith.constant dense<0.000000e+00> : vector<2x16xf32>
    %143 = tpu.matmul %132, %142, %cst_75 {dimension_numbers = #tpu.dot_dimension_numbers<[1], [0], [0], [1], [0, 0, 1, 1], [], []>} : vector<2x4xf32>, vector<4x16xf32>, vector<2x16xf32> -> vector<2x16xf32>
    %cst_76 = arith.constant 2.000000e+00 : f32
    %144 = vector.broadcast %cst_76 : f32 to vector<2x16xf32>
    %145 = arith.mulf %144, %143 : vector<2x16xf32>
    %146 = arith.addf %141, %145 : vector<2x16xf32>
    %cst_77 = arith.constant 5.000000e-01 : f32
    %147 = vector.broadcast %cst_77 : f32 to vector<2x16xf32>
    %148 = arith.mulf %147, %146 : vector<2x16xf32>
    %149 = math.exp %148 : vector<2x16xf32>
    %c0_78 = arith.constant 0 : index
    %c0_79 = arith.constant 0 : index
    %150 = vector.load %arg4[%c0_78, %c0_79] : memref<2x16xf32, #tpu.memory_space<vmem>>, vector<2x16xf32>
    %151 = arith.mulf %150, %149 : vector<2x16xf32>
    %152 = arith.addf %139, %151 : vector<2x16xf32>
    %153 = arith.mulf %139, %139 : vector<2x16xf32>
    %154 = math.exp %146 : vector<2x16xf32>
    %155 = arith.addf %153, %154 : vector<2x16xf32>
    %156 = arith.subf %155, %146 : vector<2x16xf32>
    %cst_80 = arith.constant 1.000000e+00 : f32
    %157 = vector.broadcast %cst_80 : f32 to vector<2x16xf32>
    %158 = arith.subf %156, %157 : vector<2x16xf32>
    %cst_81 = arith.constant 5.000000e-01 : f32
    %159 = vector.broadcast %cst_81 : f32 to vector<2x16xf32>
    %160 = arith.mulf %159, %158 : vector<2x16xf32>
    %c0_82 = arith.constant 0 : index
    %c0_83 = arith.constant 0 : index
    %161 = vector.load %arg34[%c0_82, %c0_83] : memref<2x16xf32, #tpu.memory_space<vmem>>, vector<2x16xf32>
    tpu.vector_store %arg34[%c0_82, %c0_83], %160 {strides = array<i32>} : memref<2x16xf32, #tpu.memory_space<vmem>>, vector<2x16xf32>,
    %c0_84 = arith.constant 0 : index
    %c0_85 = arith.constant 0 : index
    %162 = vector.load %arg32[%c0_84, %c0_85] : memref<16x32xf32, #tpu.memory_space<vmem>>, vector<16x32xf32>
    %cst_86 = arith.constant dense<0.000000e+00> : vector<2x32xf32>
    %163 = tpu.matmul %152, %162, %cst_86 {dimension_numbers = #tpu.dot_dimension_numbers<[1], [0], [0], [1], [0, 0, 1, 1], [], []>} : vector<2x16xf32>, vector<16x32xf32>, vector<2x32xf32> -> vector<2x32xf32>
    %164 = vector.shape_cast %163 : vector<2x32xf32> to vector<2x1x32xf32>
    %165 = vector.broadcast %164 : vector<2x1x32xf32> to vector<2x8x32xf32>
    %166 = arith.addf %23, %165 : vector<2x8x32xf32>
    %c0_87 = arith.constant 0 : index
    %c0_88 = arith.constant 0 : index
    %167 = vector.load %arg17[%c0_87, %c0_88] : memref<32x32xf32, #tpu.memory_space<vmem>>, vector<32x32xf32>
    %c0_89 = arith.constant 0 : index
    %c0_90 = arith.constant 0 : index
    %168 = vector.load %arg18[%c0_89, %c0_90] : memref<32x32xf32, #tpu.memory_space<vmem>>, vector<32x32xf32>
    %c0_91 = arith.constant 0 : index
    %c0_92 = arith.constant 0 : index
    %169 = vector.load %arg19[%c0_91, %c0_92] : memref<32x32xf32, #tpu.memory_space<vmem>>, vector<32x32xf32>
    %c0_93 = arith.constant 0 : index
    %c0_94 = arith.constant 0 : index
    %170 = vector.load %arg20[%c0_93, %c0_94] : memref<32x32xf32, #tpu.memory_space<vmem>>, vector<32x32xf32>
    %c0_95 = arith.constant 0 : index
    %c0_96 = arith.constant 0 : index
    %171 = vector.load %arg21[%c0_95, %c0_96] : memref<32x64xf32, #tpu.memory_space<vmem>>, vector<32x64xf32>
    %c0_97 = arith.constant 0 : index
    %c0_98 = arith.constant 0 : index
    %172 = vector.load %arg22[%c0_97, %c0_98] : memref<64x32xf32, #tpu.memory_space<vmem>>, vector<64x32xf32>
    %c0_99 = arith.constant 0 : index
    %c0_100 = arith.constant 0 : index
    %173 = vector.load %arg23[%c0_99, %c0_100] : memref<1x32xf32, #tpu.memory_space<vmem>>, vector<1x32xf32>
    %c0_101 = arith.constant 0 : index
    %c0_102 = arith.constant 0 : index
    %174 = vector.load %arg24[%c0_101, %c0_102] : memref<1x32xf32, #tpu.memory_space<vmem>>, vector<1x32xf32>
    %c0_103 = arith.constant 0 : index
    %c0_104 = arith.constant 0 : index
    %175 = vector.load %arg25[%c0_103, %c0_104] : memref<1x32xf32, #tpu.memory_space<vmem>>, vector<1x32xf32>
    %c0_105 = arith.constant 0 : index
    %c0_106 = arith.constant 0 : index
    %176 = vector.load %arg26[%c0_105, %c0_106] : memref<1x32xf32, #tpu.memory_space<vmem>>, vector<1x32xf32>
    %177 = vector.shape_cast %166 : vector<2x8x32xf32> to vector<16x32xf32>
    %cst_107 = arith.constant dense<0.000000e+00> : vector<16x32xf32>
    %178 = tpu.matmul %177, %167, %cst_107 {dimension_numbers = #tpu.dot_dimension_numbers<[1], [0], [0], [1], [0, 0, 1, 1], [], []>} : vector<16x32xf32>, vector<32x32xf32>, vector<16x32xf32> -> vector<16x32xf32>
    %179 = vector.shape_cast %178 : vector<16x32xf32> to vector<2x8x32xf32>
    %cst_108 = arith.constant dense<0.000000e+00> : vector<16x32xf32>
    %180 = tpu.matmul %177, %168, %cst_108 {dimension_numbers = #tpu.dot_dimension_numbers<[1], [0], [0], [1], [0, 0, 1, 1], [], []>} : vector<16x32xf32>, vector<32x32xf32>, vector<16x32xf32> -> vector<16x32xf32>
    %181 = vector.shape_cast %180 : vector<16x32xf32> to vector<2x8x32xf32>
    %cst_109 = arith.constant dense<0.000000e+00> : vector<16x32xf32>
    %182 = tpu.matmul %177, %169, %cst_109 {dimension_numbers = #tpu.dot_dimension_numbers<[1], [0], [0], [1], [0, 0, 1, 1], [], []>} : vector<16x32xf32>, vector<32x32xf32>, vector<16x32xf32> -> vector<16x32xf32>
    %183 = vector.shape_cast %182 : vector<16x32xf32> to vector<2x8x32xf32>
    "tpu.trace_start"() <{level = 10 : i32, message = "bqd,bkd->bqk"}> : () -> ()
    %cst_110 = arith.constant dense<0.000000e+00> : vector<2x8x8xf32>
    %184 = tpu.matmul %179, %181, %cst_110 {dimension_numbers = #tpu.dot_dimension_numbers<[2], [2], [1], [1], [0, 0, 0, 1, 1, 1], [0], [0]>} : vector<2x8x32xf32>, vector<2x8x32xf32>, vector<2x8x8xf32> -> vector<2x8x8xf32>
    "tpu.trace_stop"() : () -> ()
    %cst_111 = arith.constant 0.176776692 : f32
    %185 = vector.broadcast %cst_111 : f32 to vector<2x8x8xf32>
    %186 = arith.mulf %184, %185 : vector<2x8x8xf32>
    %187 = vector.shape_cast %2 : vector<2x8xf32> to vector<2x1x8xf32>
    %cst_112 = arith.constant 0.000000e+00 : f32
    %188 = vector.broadcast %cst_112 : f32 to vector<2x1x8xf32>
    %189 = arith.cmpf ogt, %187, %188 : vector<2x1x8xf32>
    %cst_113 = arith.constant -1.000000e+09 : f32
    %190 = vector.shape_cast %189 : vector<2x1x8xi1> to vector<2x1x8xi1>
    %191 = vector.broadcast %190 : vector<2x1x8xi1> to vector<2x8x8xi1>
    %192 = vector.broadcast %cst_113 : f32 to vector<2x8x8xf32>
    %193 = arith.select %191, %186, %192 : vector<2x8x8xi1>, vector<2x8x8xf32>
    %194 = tpu.iota {dimensions = array<i32: 0>} : vector<8x8xi32>
    %195 = tpu.iota {dimensions = array<i32: 1>} : vector<8x8xi32>
    %196 = arith.cmpi sle, %195, %194 : vector<8x8xi32>
    %197 = vector.shape_cast %196 : vector<8x8xi1> to vector<1x8x8xi1>
    %cst_114 = arith.constant -1.000000e+09 : f32
    %198 = vector.shape_cast %197 : vector<1x8x8xi1> to vector<1x8x8xi1>
    %199 = vector.broadcast %198 : vector<1x8x8xi1> to vector<2x8x8xi1>
    %200 = vector.broadcast %cst_114 : f32 to vector<2x8x8xf32>
    %201 = arith.select %199, %193, %200 : vector<2x8x8xi1>, vector<2x8x8xf32>
    %cst_115 = arith.constant dense<0xFF800000> : vector<2x8xf32>
    %202 = vector.multi_reduction <maximumf>, %201, %cst_115 [2] : vector<2x8x8xf32> to vector<2x8xf32>
    %203 = vector.shape_cast %202 : vector<2x8xf32> to vector<2x8x1xf32>
    %204 = vector.broadcast %203 : vector<2x8x1xf32> to vector<2x8x8xf32>
    %205 = arith.subf %201, %204 : vector<2x8x8xf32>
    %206 = math.exp %205 : vector<2x8x8xf32>
    %cst_116 = arith.constant dense<0.000000e+00> : vector<2x8xf32>
    %207 = vector.multi_reduction <add>, %206, %cst_116 [2] : vector<2x8x8xf32> to vector<2x8xf32>
    %208 = vector.shape_cast %207 : vector<2x8xf32> to vector<2x8x1xf32>
    %209 = tpu.reciprocal %208 {approx = true} : vector<2x8x1xf32> -> vector<2x8x1xf32>
    %210 = vector.broadcast %209 : vector<2x8x1xf32> to vector<2x8x8xf32>
    %211 = arith.mulf %206, %210 : vector<2x8x8xf32>
    "tpu.trace_start"() <{level = 10 : i32, message = "bqk,bkd->bqd"}> : () -> ()
    %cst_117 = arith.constant dense<0.000000e+00> : vector<2x8x32xf32>
    %212 = tpu.matmul %211, %183, %cst_117 {dimension_numbers = #tpu.dot_dimension_numbers<[2], [1], [1], [2], [0, 0, 0, 1, 1, 2], [0], [0]>} : vector<2x8x8xf32>, vector<2x8x32xf32>, vector<2x8x32xf32> -> vector<2x8x32xf32>
    "tpu.trace_stop"() : () -> ()
    %213 = vector.shape_cast %212 : vector<2x8x32xf32> to vector<16x32xf32>
    %cst_118 = arith.constant dense<0.000000e+00> : vector<16x32xf32>
    %214 = tpu.matmul %213, %170, %cst_118 {dimension_numbers = #tpu.dot_dimension_numbers<[1], [0], [0], [1], [0, 0, 1, 1], [], []>} : vector<16x32xf32>, vector<32x32xf32>, vector<16x32xf32> -> vector<16x32xf32>
    %215 = arith.addf %177, %214 : vector<16x32xf32>
    %cst_119 = arith.constant dense<0.000000e+00> : vector<16xf32>
    %216 = vector.multi_reduction <add>, %215, %cst_119 [1] : vector<16x32xf32> to vector<16xf32>
    %217 = vector.shape_cast %216 : vector<16xf32> to vector<16x1xf32>
    %cst_120 = arith.constant 3.200000e+01 : f32
    %218 = vector.broadcast %cst_120 : f32 to vector<16x1xf32>
    %219 = arith.divf %217, %218 : vector<16x1xf32>
    %220 = vector.broadcast %219 : vector<16x1xf32> to vector<16x32xf32>
    %221 = arith.subf %215, %220 : vector<16x32xf32>
    %222 = arith.mulf %221, %221 : vector<16x32xf32>
    %cst_121 = arith.constant dense<0.000000e+00> : vector<16xf32>
    %223 = vector.multi_reduction <add>, %222, %cst_121 [1] : vector<16x32xf32> to vector<16xf32>
    %224 = vector.shape_cast %223 : vector<16xf32> to vector<16x1xf32>
    %cst_122 = arith.constant 3.200000e+01 : f32
    %225 = vector.broadcast %cst_122 : f32 to vector<16x1xf32>
    %226 = arith.divf %224, %225 : vector<16x1xf32>
    %227 = vector.broadcast %219 : vector<16x1xf32> to vector<16x32xf32>
    %228 = arith.subf %215, %227 : vector<16x32xf32>
    %cst_123 = arith.constant 9.99999974E-6 : f32
    %229 = vector.broadcast %cst_123 : f32 to vector<16x1xf32>
    %230 = arith.addf %226, %229 : vector<16x1xf32>
    %231 = math.rsqrt %230 : vector<16x1xf32>
    %232 = vector.broadcast %231 : vector<16x1xf32> to vector<16x32xf32>
    %233 = arith.mulf %228, %232 : vector<16x32xf32>
    %234 = vector.broadcast %173 : vector<1x32xf32> to vector<16x32xf32>
    %235 = arith.mulf %233, %234 : vector<16x32xf32>
    %236 = vector.broadcast %174 : vector<1x32xf32> to vector<16x32xf32>
    %237 = arith.addf %235, %236 : vector<16x32xf32>
    %cst_124 = arith.constant dense<0.000000e+00> : vector<16x64xf32>
    %238 = tpu.matmul %237, %171, %cst_124 {dimension_numbers = #tpu.dot_dimension_numbers<[1], [0], [0], [1], [0, 0, 1, 1], [], []>} : vector<16x32xf32>, vector<32x64xf32>, vector<16x64xf32> -> vector<16x64xf32>
    %239 = arith.mulf %238, %238 : vector<16x64xf32>
    %240 = arith.mulf %238, %239 : vector<16x64xf32>
    %cst_125 = arith.constant 4.471500e-02 : f32
    %241 = vector.broadcast %cst_125 : f32 to vector<16x64xf32>
    %242 = arith.mulf %241, %240 : vector<16x64xf32>
    %243 = arith.addf %238, %242 : vector<16x64xf32>
    %cst_126 = arith.constant 0.797884583 : f32
    %244 = vector.broadcast %cst_126 : f32 to vector<16x64xf32>
    %245 = arith.mulf %244, %243 : vector<16x64xf32>
    %246 = math.tanh %245 : vector<16x64xf32>
    %cst_127 = arith.constant 1.000000e+00 : f32
    %247 = vector.broadcast %cst_127 : f32 to vector<16x64xf32>
    %248 = arith.addf %247, %246 : vector<16x64xf32>
    %cst_128 = arith.constant 5.000000e-01 : f32
    %249 = vector.broadcast %cst_128 : f32 to vector<16x64xf32>
    %250 = arith.mulf %249, %248 : vector<16x64xf32>
    %251 = arith.mulf %238, %250 : vector<16x64xf32>
    %cst_129 = arith.constant dense<0.000000e+00> : vector<16x32xf32>
    %252 = tpu.matmul %251, %172, %cst_129 {dimension_numbers = #tpu.dot_dimension_numbers<[1], [0], [0], [1], [0, 0, 1, 1], [], []>} : vector<16x64xf32>, vector<64x32xf32>, vector<16x32xf32> -> vector<16x32xf32>
    %253 = arith.addf %237, %252 : vector<16x32xf32>
    %cst_130 = arith.constant dense<0.000000e+00> : vector<16xf32>
    %254 = vector.multi_reduction <add>, %253, %cst_130 [1] : vector<16x32xf32> to vector<16xf32>
    %255 = vector.shape_cast %254 : vector<16xf32> to vector<16x1xf32>
    %cst_131 = arith.constant 3.200000e+01 : f32
    %256 = vector.broadcast %cst_131 : f32 to vector<16x1xf32>
    %257 = arith.divf %255, %256 : vector<16x1xf32>
    %258 = vector.broadcast %257 : vector<16x1xf32> to vector<16x32xf32>
    %259 = arith.subf %253, %258 : vector<16x32xf32>
    %260 = arith.mulf %259, %259 : vector<16x32xf32>
    %cst_132 = arith.constant dense<0.000000e+00> : vector<16xf32>
    %261 = vector.multi_reduction <add>, %260, %cst_132 [1] : vector<16x32xf32> to vector<16xf32>
    %262 = vector.shape_cast %261 : vector<16xf32> to vector<16x1xf32>
    %cst_133 = arith.constant 3.200000e+01 : f32
    %263 = vector.broadcast %cst_133 : f32 to vector<16x1xf32>
    %264 = arith.divf %262, %263 : vector<16x1xf32>
    %265 = vector.broadcast %257 : vector<16x1xf32> to vector<16x32xf32>
    %266 = arith.subf %253, %265 : vector<16x32xf32>
    %cst_134 = arith.constant 9.99999974E-6 : f32
    %267 = vector.broadcast %cst_134 : f32 to vector<16x1xf32>
    %268 = arith.addf %264, %267 : vector<16x1xf32>
    %269 = math.rsqrt %268 : vector<16x1xf32>
    %270 = vector.broadcast %269 : vector<16x1xf32> to vector<16x32xf32>
    %271 = arith.mulf %266, %270 : vector<16x32xf32>
    %272 = vector.broadcast %175 : vector<1x32xf32> to vector<16x32xf32>
    %273 = arith.mulf %271, %272 : vector<16x32xf32>
    %274 = vector.broadcast %176 : vector<1x32xf32> to vector<16x32xf32>
    %275 = arith.addf %273, %274 : vector<16x32xf32>
    %c0_135 = arith.constant 0 : index
    %c0_136 = arith.constant 0 : index
    %276 = vector.load %arg33[%c0_135, %c0_136] : memref<32x128xf32, #tpu.memory_space<vmem>>, vector<32x128xf32>
    %cst_137 = arith.constant dense<0.000000e+00> : vector<16x128xf32>
    %277 = tpu.matmul %275, %276, %cst_137 {dimension_numbers = #tpu.dot_dimension_numbers<[1], [0], [0], [1], [0, 0, 1, 1], [], []>} : vector<16x32xf32>, vector<32x128xf32>, vector<16x128xf32> -> vector<16x128xf32>
    %cst_138 = arith.constant dense<0xFF800000> : vector<16xf32>
    %278 = vector.multi_reduction <maximumf>, %277, %cst_138 [1] : vector<16x128xf32> to vector<16xf32>
    %279 = vector.shape_cast %278 : vector<16xf32> to vector<16x1xf32>
    %280 = vector.broadcast %279 : vector<16x1xf32> to vector<16x128xf32>
    %281 = arith.subf %277, %280 : vector<16x128xf32>
    %282 = math.exp %281 : vector<16x128xf32>
    %cst_139 = arith.constant dense<0.000000e+00> : vector<16xf32>
    %283 = vector.multi_reduction <add>, %282, %cst_139 [1] : vector<16x128xf32> to vector<16xf32>
    %284 = vector.shape_cast %283 : vector<16xf32> to vector<16x1xf32>
    %285 = math.log %284 : vector<16x1xf32>
    %286 = arith.addf %285, %279 : vector<16x1xf32>
    %287 = arith.mulf %8, %277 : vector<16x128xf32>
    %cst_140 = arith.constant dense<0.000000e+00> : vector<16xf32>
    %288 = vector.multi_reduction <add>, %287, %cst_140 [1] : vector<16x128xf32> to vector<16xf32>
    %289 = vector.shape_cast %288 : vector<16xf32> to vector<16x1xf32>
    %290 = arith.subf %286, %289 : vector<16x1xf32>
    %cst_141 = arith.constant dense<0.000000e+00> : vector<1xf32>
    %291 = vector.multi_reduction <add>, %290, %cst_141 [0] : vector<16x1xf32> to vector<1xf32>
    %292 = vector.shape_cast %291 : vector<1xf32> to vector<1x1xf32>
    %cst_142 = arith.constant 6.250000e-02 : f32
    %293 = vector.broadcast %cst_142 : f32 to vector<1x1xf32>
    %294 = arith.mulf %292, %293 : vector<1x1xf32>
    %c0_143 = arith.constant 0 : index
    %c0_144 = arith.constant 0 : index
    %295 = vector.load %arg35[%c0_143, %c0_144] : memref<1x1xf32, #tpu.memory_space<vmem>>, vector<1x1xf32>
    tpu.vector_store %arg35[%c0_143, %c0_144], %294 {strides = array<i32>} : memref<1x1xf32, #tpu.memory_space<vmem>>, vector<1x1xf32>,
    return
  }
}

</mosaic_0001>

<bundles_post_ra>
// kernel: lora_vae_forward.1
= control target key start
LH: loop header
LB: loop body
LE: loop exit
PB: predicated region body
PF: predicated region fallthrough
CT: control target
= control target key end

     0   :  { %s3646_s6 = smov 1   ;;  %s3647_s10 = smov 2   ;;  %s4208_s0 = inlined_call_operand.smem [shape: u32[36], index: -1, kind: input, shape index: {}] }
   0x1   :  { %s3695_s5 = sld [smem:[%s4208_s0]]   ;;  %s3648_s14 = smov 3  }
   0x2   :  { %s3700_s9 = sld [smem:[%s4208_s0 + %s3646_s6]]   ;;  %s3649_s18 = smov 4  }
   0x3   :  { %s3705_s13 = sld [smem:[%s4208_s0 + %s3647_s10]]   ;;  %s3650_s22 = smov 5  }
   0x4   :  { %s3710_s17 = sld [smem:[%s4208_s0 + %s3648_s14]]   ;;  %s3651_s26 = smov 6  }
   0x5   :  { %s3715_s21 = sld [smem:[%s4208_s0 + %s3649_s18]]   ;;  %s3652_s30 = smov 7  }
   0x6   :  { %s3720_s25 = sld [smem:[%s4208_s0 + %s3650_s22]]   ;;  %s3653_s4 = smov 8  }
   0x7   :  { %s3725_s29 = sld [smem:[%s4208_s0 + %s3651_s26]]   ;;  %s3654_s10 = smov 9  }
   0x8   :  { %s3730_s3 = sld [smem:[%s4208_s0 + %s3652_s30]]   ;;  %s3655_s15 = smov 10  }
   0x9   :  { %s3735_s8 = sld [smem:[%s4208_s0 + %s3653_s4]]   ;;  %s3656_s20 = smov 11  }
   0xa   :  { %s3740_s14 = sld [smem:[%s4208_s0 + %s3654_s10]]   ;;  %s3657_s26 = smov 12  }
   0xb   :  { %4218 = sst [smem:[#allocation5_spill]] %s3715_s21  ;;  %s3658_s1 = smov 13  }
   0xc   :  { %s3745_s19 = sld [smem:[%s4208_s0 + %s3655_s15]]   ;;  %s3659_s7 = smov 14  }
   0xd   :  { %s3750_s24 = sld [smem:[%s4208_s0 + %s3656_s20]]   ;;  %s3660_s15 = smov 15  }
   0xe   :  { %s3755_s30 = sld [smem:[%s4208_s0 + %s3657_s26]]   ;;  %s3661_s22 = smov 16  }
   0xf   :  { %s3760_s6 = sld [smem:[%s4208_s0 + %s3658_s1]]   ;;  %s3662_s28 = smov 17  }
  0x10   :  { %s3765_s12 = sld [smem:[%s4208_s0 + %s3659_s7]]   ;;  %s3663_s7 = smov 18  }
  0x11   :  { %s3770_s20 = sld [smem:[%s4208_s0 + %s3660_s15]]   ;;  %s3664_s15 = smov 19  }
  0x12   :  { %s3775_s27 = sld [smem:[%s4208_s0 + %s3661_s22]]   ;;  %s3665_s22 = smov 20  }
  0x13   :  { %s3780_s4 = sld [smem:[%s4208_s0 + %s3662_s28]]   ;;  %s3666_s28 = smov 21  }
  0x14   :  { %s3785_s21 = sld [smem:[%s4208_s0 + %s3663_s7]]   ;;  %s3667_s7 = smov 22  }
  0x17   :  { %4219 = sst [smem:[#allocation6_spill]] %s3770_s20 }
  0x18   :  { %4220 = sst [smem:[#allocation7_spill]] %s3775_s27 }
  0x19   :  { %4221 = sst [smem:[#allocation8_spill]] %s3780_s4 }
  0x1a   :  { %4222 = sst [smem:[#allocation9_spill]] %s3785_s21 }
  0x1b   :  { %s3790_s20 = sld [smem:[%s4208_s0 + %s3664_s15]]   ;;  %s3668_s15 = smov 23  }
  0x1c   :  { %s3795_s27 = sld [smem:[%s4208_s0 + %s3665_s22]]   ;;  %s3669_s22 = smov 24  }
  0x1d   :  { %s3800_s4 = sld [smem:[%s4208_s0 + %s3666_s28]]   ;;  %s3670_s28 = smov 25  }
  0x1e   :  { %s3805_s21 = sld [smem:[%s4208_s0 + %s3667_s7]]   ;;  %s3671_s7 = smov 26  }
  0x21   :  { %4223 = sst [smem:[#allocation10_spill]] %s3790_s20 }
  0x22   :  { %4224 = sst [smem:[#allocation11_spill]] %s3795_s27 }
  0x23   :  { %4225 = sst [smem:[#allocation12_spill]] %s3800_s4 }
  0x24   :  { %4226 = sst [smem:[#allocation13_spill]] %s3805_s21 }
  0x25   :  { %s3810_s20 = sld [smem:[%s4208_s0 + %s3668_s15]]   ;;  %s3672_s15 = smov 27  }
  0x26   :  { %s3815_s27 = sld [smem:[%s4208_s0 + %s3669_s22]]   ;;  %s3673_s22 = smov 28  }
  0x27   :  { %s3820_s4 = sld [smem:[%s4208_s0 + %s3670_s28]]   ;;  %s3674_s28 = smov 29  }
  0x28   :  { %s3825_s21 = sld [smem:[%s4208_s0 + %s3671_s7]]   ;;  %s3675_s7 = smov 30  }
  0x2b   :  { %4227 = sst [smem:[#allocation14_spill]] %s3810_s20 }
  0x2c   :  { %4228 = sst [smem:[#allocation15_spill]] %s3815_s27 }
  0x2d   :  { %4229 = sst [smem:[#allocation16_spill]] %s3820_s4 }
  0x2e   :  { %4230 = sst [smem:[#allocation17_spill]] %s3825_s21 }
  0x2f   :  { %s3830_s20 = sld [smem:[%s4208_s0 + %s3672_s15]]   ;;  %s3676_s15 = smov 31  }
  0x30   :  { %s3835_s27 = sld [smem:[%s4208_s0 + %s3673_s22]]   ;;  %s3677_s22 = smov 32  }
  0x31   :  { %s3840_s4 = sld [smem:[%s4208_s0 + %s3674_s28]]   ;;  %s3678_s28 = smov 33  }
  0x32   :  { %s3845_s21 = sld [smem:[%s4208_s0 + %s3675_s7]]   ;;  %s3679_s7 = smov 34  }
  0x35   :  { %4231 = sst [smem:[#allocation18_spill]] %s3830_s20 }
  0x36   :  { %4232 = sst [smem:[#allocation19_spill]] %s3835_s27 }
  0x37   :  { %4233 = sst [smem:[#allocation20_spill]] %s3840_s4 }
  0x38   :  { %4234 = sst [smem:[#allocation21_spill]] %s3845_s21 }
  0x39   :  { %s3850_s20 = sld [smem:[%s4208_s0 + %s3676_s15]]   ;;  %s3680_s15 = smov 35  }
  0x3a   :  { %s3855_s27 = sld [smem:[%s4208_s0 + %s3677_s22]]  }
  0x3b   :  { %s3860_s4 = sld [smem:[%s4208_s0 + %s3678_s28]]  }
  0x3c   :  { %s3865_s21 = sld [smem:[%s4208_s0 + %s3679_s7]]  }
  0x3f   :  { %4235 = sst [smem:[#allocation22_spill]] %s3850_s20 }
  0x40   :  { %s3870_s20 = sld [smem:[%s4208_s0 + %s3680_s15]]  }
  0x41   :  { %v166_v0 = vld [vmem:[%s3695_s5] sm:$0xff]  ;;  %v161_v1 = vld [vmem:[%s3720_s25 + $0x78] sm:$0xff]  ;;  %v3681_v2 = vmov 0   ;;  %v160_v3 = vld [vmem:[%s3720_s25 + $0x70] sm:$0xff] }
  0x42   :  { %3570 = vset.pattern.permute.xlu0 %v3681_v2  ;;  %3210 = vmatprep.subr.mxu0 %v161_v1  ;;  %v159_v4 = vld [vmem:[%s3720_s25 + $0x68] sm:$0xff]  ;;  %v158_v6 = vld [vmem:[%s3720_s25 + $0x60] sm:$0xff]  ;;  %v157_v7 = vld [vmem:[%s3720_s25 + $0x58] sm:$0xff] }
  0x43   :  { %169 = vperm.xlu0 %3570, %v166_v0   ;;  %3211 = vmatpush3.msra.mxu0 %v161_v1  ;;  %v167_v5 = vld [vmem:[%s3695_s5 + $0x8] sm:$0xff]  ;;  %v180_v8 = vld [vmem:[%s3700_s9] sm:$0xff] }
  0x44   :  { %3212 = vmatprep.subr.mxu0 %v160_v3  ;;  %3571 = vset.pattern.permute.xlu1 %v3681_v2 }
  0x45   :  { %3213 = vmatpush3.msra.mxu0 %v160_v3  ;;  %3245 = vmatprep.subr.mxu1 %v161_v1 }
  0x46   :  { %3214 = vmatprep.subr.mxu0 %v159_v4  ;;  %3246 = vmatpush3.msra.mxu1 %v161_v1 }
  0x47   :  { %172 = vperm.xlu0 %3570, %v167_v5   ;;  %3215 = vmatpush3.msra.mxu0 %v159_v4 }
  0x48   :  { %77 = vsyncpa [#allocation3], 0  ;;  %3216 = vmatprep.subr.mxu0 %v158_v6  ;;  %183 = vperm.xlu1 %3571, %v180_v8   ;;  %v156_v9 = vld [vmem:[%s3720_s25 + $0x50] sm:$0xff]  ;;  %v181_v10 = vld [vmem:[%s3700_s9 + $0x8] sm:$0xff]  ;;  %v164_v23 = vlaneseq  ;;  %v3682_v26 = vmov 1.0   ;;  %v3683_v37 = vmov 0.0  }
  0x49   :  { %3217 = vmatpush3.msra.mxu0 %v158_v6  ;;  %3247 = vmatprep.subr.mxu1 %v160_v3  ;;  %v155_v11 = vld [vmem:[%s3720_s25 + $0x48] sm:$0xff]  ;;  %v154_v12 = vld [vmem:[%s3720_s25 + $0x40] sm:$0xff]  ;;  %v153_v13 = vld [vmem:[%s3720_s25 + $0x38] sm:$0xff]  ;;  %vm380_vm4 = vcmask 261120   ;;  %vm3684_vm5 = vmmov 0   ;;  %vm807_vm9 = vcmask 64512  }
  0x4a   :  { %3218 = vmatprep.subr.mxu0 %v157_v7  ;;  %3248 = vmatpush3.msra.mxu1 %v160_v3  ;;  %v152_v14 = vld [vmem:[%s3720_s25 + $0x30] sm:$0xff]  ;;  %v151_v15 = vld [vmem:[%s3720_s25 + $0x28] sm:$0xff]  ;;  %v150_v16 = vld [vmem:[%s3720_s25 + $0x20] sm:$0xff]  ;;  %v3897_v24 = vand.u32 127, %v164_v23  ;;  %v3685_v55 = vmov 1966171168  }
  0x4b   :  { %3219 = vmatpush3.msra.mxu0 %v157_v7  ;;  %3249 = vmatprep.subr.mxu1 %v159_v4  ;;  %v149_v17 = vld [vmem:[%s3720_s25 + $0x18] sm:$0xff]  ;;  %v148_v18 = vld [vmem:[%s3720_s25 + $0x10] sm:$0xff]  ;;  %v147_v19 = vld [vmem:[%s3720_s25 + $0x8] sm:$0xff]  ;;  %v776_v56 = vunpack.c.l.s4 %v3685_v55  ;;  %v3968_v57 = vshrl.u32 %v164_v23, 7  ;;  %vm1201_vm11 = vcmask 523264   ;;  %s4240_s0 = sld [smem:[#allocation18_spill]] }
  0x4c   :  { %3220 = vmatprep.subr.mxu0 %v156_v9  ;;  %186 = vperm.xlu1 %3571, %v181_v10   ;;  %v146_v20 = vld [vmem:[%s3720_s25] sm:$0xff]  ;;  %v351_v21 = vld [vmem:[%s3730_s3 + $0x18] sm:$0xff]  ;;  %v350_v29 = vld [vmem:[%s3730_s3 + $0x10] sm:$0xff]  ;;  %s4241_s5 = sld [smem:[#allocation22_spill]]  ;;  %vm1447_vm12 = vcmask 1043456   ;;  %vm1364_vm13 = vcmask 1041409  }
  0x4d   :  { %3221 = vmatpush3.msra.mxu0 %v156_v9  ;;  %3250 = vmatpush3.msra.mxu1 %v159_v4  ;;  %v355_v22 = vld [vmem:[%s3735_s8 + $0x18] sm:$0xff]  ;;  %v354_v31 = vld [vmem:[%s3735_s8 + $0x10] sm:$0xff]  ;;  %v349_v32 = vld [vmem:[%s3730_s3 + $0x8] sm:$0xff]  ;;  %v777_v58 = vunpack.c.0.s8 %v776_v56  ;;  %v3977_v0 = vsub.s32 0, %v3968_v57  ;;  %s4242_s9 = sld [smem:[#allocation6_spill]]  ;;  %vm1443_vm14 = vcmask 31744  }
  0x4e   :  { %3222 = vmatprep.subr.mxu0 %v155_v11  ;;  %3251 = vmatprep.subr.mxu1 %v158_v6  ;;  %v353_v33 = vld [vmem:[%s3735_s8 + $0x8] sm:$0xff]  ;;  %v348_v34 = vld [vmem:[%s3730_s3] sm:$0xff]  ;;  %v359_v36 = vld [vmem:[%s3740_s14 + $0x18] sm:$0xff]  ;;  %s4245_s25 = sld [smem:[#allocation19_spill]]  ;;  %vm1758_vm15 = vcmask 130048  }
  0x4f   :  { %3223 = vmatpush3.msra.mxu0 %v155_v11  ;;  %3252 = vmatpush3.msra.mxu1 %v158_v6  ;;  %v352_v35 = vld [vmem:[%s3735_s8] sm:$0xff]  ;;  %v358_v43 = vld [vmem:[%s3740_s14 + $0x10] sm:$0xff]  ;;  %v357_v46 = vld [vmem:[%s3740_s14 + $0x8] sm:$0xff]  ;;  %v3971_v59 = vsub.s32 %v777_v58, %v3968_v57  ;;  %s4247_s3 = sld [smem:[#allocation5_spill]] }
  0x50   :  { %3224 = vmatprep.subr.mxu0 %v154_v12  ;;  %3253 = vmatprep.subr.mxu1 %v157_v7  ;;  %v3924_v39 = vld [vmem:[%s3725_s29] sm:$0xff]  ;;  %s4246_s29 = sld [smem:[#allocation20_spill]] }
  0x51   :  { %3225 = vmatpush3.msra.mxu0 %v154_v12  ;;  %3254 = vmatpush3.msra.mxu1 %v157_v7  ;;  %v356_v47 = vld [vmem:[%s3740_s14] sm:$0xff]  ;;  %s4248_s8 = sld [smem:[#allocation8_spill]] }
  0x52   :  { %3226 = vmatprep.subr.mxu0 %v153_v13  ;;  %3255 = vmatprep.subr.mxu1 %v156_v9  ;;  %v3004_v60 = vld.sshfl [vmem:[%s3705_s13] sm:$0x11 pattern:$0x75316420]  ;;  %s4243_s13 = sld [smem:[#allocation7_spill]] }
  0x53   :  { %3227 = vmatpush3.msra.mxu0 %v153_v13  ;;  %3256 = vmatpush3.msra.mxu1 %v156_v9  ;;  %v781_v61 = vrot.slane %v3004_v60, %v3971_v59  ;;  %v774_v62 = vcombine.high %v3004_v60, %v3004_v60  ;;  %s4249_s14 = sld [smem:[#allocation9_spill]] }
  0x54   :  { %3228 = vmatprep.subr.mxu0 %v152_v14  ;;  %3257 = vmatprep.subr.mxu1 %v155_v11  ;;  %s4257_s22 = sld [smem:[#allocation17_spill]] }
  0x55   :  { %3229 = vmatpush3.msra.mxu0 %v152_v14  ;;  %3258 = vmatpush3.msra.mxu1 %v155_v11  ;;  %vm791_vm6 = vcmp.gt.f32.partialorder %v781_v61, 0.0  ;;  %v788_v63 = vrot.slane %v774_v62, %v3971_v59 }
  0x56   :  { %3230 = vmatprep.subr.mxu0 %v151_v15  ;;  %3259 = vmatprep.subr.mxu1 %v154_v12  ;;  %v793_v1 = vsel %vm791_vm6, 1, %v3681_v2 }
  0x57   :  { %3231 = vmatpush3.msra.mxu0 %v151_v15  ;;  %3260 = vmatpush3.msra.mxu1 %v154_v12  ;;  %vm792_vm7 = vcmp.gt.f32.partialorder %v788_v63, 0.0  ;;  %v798_v3 = vrot.slane %v793_v1, %v3977_v0 }
  0x58   :  { %3232 = vmatprep.subr.mxu0 %v150_v16  ;;  %3261 = vmatprep.subr.mxu1 %v153_v13  ;;  %v794_v4 = vsel %vm792_vm7, 1, %v3681_v2 }
  0x59   :  { %3233 = vmatpush3.msra.mxu0 %v150_v16  ;;  %3262 = vmatpush3.msra.mxu1 %v153_v13  ;;  %vm3982_vm8 = vcmp.eq.s32.totalorder %v798_v3, 1  ;;  %v802_v7 = vrot.slane %v794_v4, %v3977_v0  ;;  %v367_v4 = vld [vmem:[%s3750_s24 + $0x18] sm:$0xff] }
  0x5a   :  { %3234 = vmatprep.subr.mxu0 %v149_v17  ;;  %3263 = vmatprep.subr.mxu1 %v152_v14 }
  0x5b   :  { %3235 = vmatpush3.msra.mxu0 %v149_v17  ;;  %3264 = vmatpush3.msra.mxu1 %v152_v14  ;;  %vm3990_vm10 = vcmp.eq.s32.totalorder %v802_v7, 1  ;;  %v365_v7 = vld [vmem:[%s3750_s24 + $0x8] sm:$0xff] }
  0x5c   :  { %3236 = vmatprep.subr.mxu0 %v148_v18  ;;  %3265 = vmatprep.subr.mxu1 %v151_v15 }
  0x5d   :  { %3237 = vmatpush3.msra.mxu0 %v148_v18  ;;  %3266 = vmatpush3.msra.mxu1 %v151_v15 }
  0x5e   :  { %3238 = vmatprep.subr.mxu0 %v147_v19  ;;  %3267 = vmatprep.subr.mxu1 %v150_v16 }
  0x5f   :  { %3239 = vmatpush3.msra.mxu0 %v147_v19  ;;  %3268 = vmatpush3.msra.mxu1 %v150_v16 }
  0x60   :  { %3240 = vmatprep.subr.mxu0 %v146_v20  ;;  %3269 = vmatprep.subr.mxu1 %v149_v17 }
  0x61   :  { %3241 = vmatpush3.msra.mxu0 %v146_v20  ;;  %3270 = vmatpush3.msra.mxu1 %v149_v17 }
  0x62   :  { %3271 = vmatprep.subr.mxu1 %v148_v18  ;;  %3280 = vmatprep.subr.mxu0 %v351_v21 }
  0x63   :  { %3272 = vmatpush3.msra.mxu1 %v148_v18 }
  0x64   :  { %3273 = vmatprep.subr.mxu1 %v147_v19 }
  0x65   :  { %3274 = vmatpush3.msra.mxu1 %v147_v19 }
  0x66   :  { %3275 = vmatprep.subr.mxu1 %v146_v20 }
  0x67   :  { %3276 = vmatpush3.msra.mxu1 %v146_v20 }
  0x68   :  { %3291 = vmatprep.subr.mxu1 %v355_v22 }
  0xbe   :  { %v3899_v25 = vpop.permute.xlu0 %169 }
  0xbf   :  { %vm174_vm0 = vcmp.eq.s32.totalorder %v3897_v24, %v3899_v25 }
  0xc0   :  { %3242 = vmatprep.mubr.msk.f32.mxu0 %vm174_vm0, %v3682_v26 }
  0xc2   :  { %v3906_v27 = vpop.permute.xlu0 %172 }
  0xc3   :  { %vm175_vm1 = vcmp.eq.s32.totalorder %v3897_v24, %v3906_v27  ;;  %v184_v28 = vpop.permute.xlu1 %183 }
  0xc4   :  { %3243 = vmatmul.mubr.msk.f32.vlgmr.msra.gmra.mxu0 %vm175_vm1, %v3682_v26  ;;  %vm188_vm2 = vcmp.eq.s32.totalorder %v3897_v24, %v184_v28 }
  0xc5   :  { %3277 = vmatprep.mubr.msk.f32.mxu1 %vm188_vm2, %v3682_v26  ;;  %3281 = vmatpush3.msra.mxu0 %v351_v21  ;;  %vm1754_vm2 = vcmask 123904  }
  0xc6   :  { %3282 = vmatprep.subr.mxu0 %v350_v29 }
  0xc7   :  { %v187_v30 = vpop.permute.xlu1 %186  ;;  %3283 = vmatpush3.msra.mxu0 %v350_v29 }
  0xc8   :  { %vm189_vm3 = vcmp.eq.s32.totalorder %v3897_v24, %v187_v30  ;;  %3284 = vmatprep.subr.mxu0 %v349_v32  ;;  %v363_v30 = vld [vmem:[%s3745_s19 + $0x18] sm:$0xff] }
  0xc9   :  { %3278 = vmatmul.mubr.msk.f32.vlgmr.msra.gmra.mxu1 %vm189_vm3, %v3682_v26  ;;  %3285 = vmatpush3.msra.mxu0 %v349_v32  ;;  %vm2288_vm3 = vcmp.le.s32.totalorder %v3897_v24, %v3968_v57 }
  0xca   :  { %3292 = vmatpush3.msra.mxu1 %v355_v22  ;;  %3286 = vmatprep.subr.mxu0 %v348_v34 }
  0xcb   :  { %3293 = vmatprep.subr.mxu1 %v354_v31  ;;  %3287 = vmatpush3.msra.mxu0 %v348_v34 }
  0xcc   :  { %3294 = vmatpush3.msra.mxu1 %v354_v31  ;;  %3302 = vmatprep.subr.mxu0 %v359_v36 }
  0xcd   :  { %3295 = vmatprep.subr.mxu1 %v353_v33 }
  0xce   :  { %3296 = vmatpush3.msra.mxu1 %v353_v33 }
  0xcf   :  { %3297 = vmatprep.subr.mxu1 %v352_v35 }
  0xd0   :  { %3298 = vmatpush3.msra.mxu1 %v352_v35  ;;  %v362_v35 = vld [vmem:[%s3745_s19 + $0x10] sm:$0xff] }
  0xd1   :  { %3313 = vmatprep.subr.mxu1 %v3683_v37 }
 0x184   :  { %v3244_v38 = vpop.f32.mrf.mxu0 }
 0x185   :  { %v3930_v42 = vadd.f32 %v3244_v38, %v3924_v39 }
 0x186   :  { %v260_v40 = vpop.f32.mrf.mxu0 }
 0x187   :  { %v3927_v41 = vadd.f32 %v260_v40, %v3924_v39  ;;  %v361_v40 = vld [vmem:[%s3745_s19 + $0x8] sm:$0xff] }
 0x189   :  { %3288 = vmatprep.mubr.msk.f32.mxu0 %vm380_vm4, %v3927_v41  ;;  %3299 = vmatprep.mubr.msk.f32.mxu1 %vm380_vm4, %v3927_v41  ;;  %v3279_v44 = vpop.f32.mrf.mxu1 }
 0x18a   :  { %3289 = vmatmul.mubr.msk.f32.vlgmr.msra.gmra.mxu0 %vm380_vm4, %v3930_v42  ;;  %3300 = vmatmul.mubr.msk.f32.vlgmr.msra.gmra.mxu1 %vm380_vm4, %v3930_v42  ;;  %v3942_v45 = vadd.f32 %v3279_v44, %v3924_v39 }
 0x18b   :  { %3303 = vmatpush3.msra.mxu0 %v359_v36  ;;  %3310 = vmatprep.mubr.msk.f32.mxu0 %vm380_vm4, %v3927_v41  ;;  %v3955_v48 = vpop.f32.mrf.mxu1 }
 0x18c   :  { %3304 = vmatprep.subr.mxu0 %v358_v43  ;;  %3315 = vmatprep.mubr.msk.f32.mxu1 %vm3684_vm5, %v3683_v37 }
 0x18d   :  { %3305 = vmatpush3.msra.mxu0 %v358_v43  ;;  %v360_v43 = vld [vmem:[%s3745_s19] sm:$0xff]  ;;  %s4250_s19 = sld [smem:[#allocation10_spill]] }
 0x18e   :  { %3306 = vmatprep.subr.mxu0 %v357_v46 }
 0x18f   :  { %3307 = vmatpush3.msra.mxu0 %v357_v46 }
 0x190   :  { %3308 = vmatprep.subr.mxu0 %v356_v47 }
 0x191   :  { %3309 = vmatpush3.msra.mxu0 %v356_v47 }
 0x192   :  { %3311 = vmatmul.mubr.msk.f32.vlgmr.msra.gmra.mxu0 %vm380_vm4, %v3930_v42  ;;  %3323 = vmatprep.subr.mxu0 %v3683_v37 }
 0x193   :  { %3325 = vmatprep.mubr.msk.f32.mxu0 %vm3684_vm5, %v3683_v37 }
 0x24a   :  { %v3301_v49 = vpop.f32.mrf.mxu1  ;;  %v3290_v50 = vpop.f32.mrf.mxu0 }
 0x24c   :  { %v528_v51 = vpop.f32.mrf.mxu1  ;;  %v453_v52 = vpop.f32.mrf.mxu0 }
 0x24d   :  { %3314 = vmatpush3.xpose.msk.msra.mxu1 %vm380_vm4, %v528_v51 }
 0x24e   :  { %3318 = vmatprep.subr.mxu1 %v3683_v37 }
 0x250   :  { %3316 = vmatmul.mubr.msk.f32.vlgmr.msra.gmra.mxu1 %vm380_vm4, %v453_v52 }
 0x251   :  { %3319 = vmatpush3.xpose.msk.msra.mxu1 %vm380_vm4, %v3301_v49  ;;  %3320 = vmatprep.mubr.msk.f32.mxu1 %vm3684_vm5, %v3683_v37 }
 0x252   :  { %v3312_v53 = vpop.f32.mrf.mxu0  ;;  %3328 = vmatprep.subr.mxu1 %v3683_v37 }
 0x254   :  { %v603_v54 = vpop.f32.mrf.mxu0  ;;  %3321 = vmatmul.mubr.msk.f32.vlgmr.msra.gmra.mxu1 %vm380_vm4, %v3290_v50 }
 0x255   :  { %3324 = vmatpush3.msra.mxu0 %v603_v54  ;;  %3329 = vmatpush3.msra.mxu1 %v3312_v53 }
 0x256   :  { %3330 = vmatprep.mubr.msk.f32.mxu1 %vm3684_vm5, %v3683_v37  ;;  %3333 = vmatprep.subr.mxu0 %v363_v30 }
 0x257   :  { %3344 = vmatprep.subr.mxu1 %v367_v4 }
 0x310   :  { %v684_v5 = vpop.f32.mrf.mxu1 }
 0x311   :  { %v764_v8 = vmul.f32 0.17677669, %v684_v5  ;;  %v366_v5 = vld [vmem:[%s3750_s24 + $0x10] sm:$0xff] }
 0x312   :  { %v3317_v9 = vpop.f32.mrf.mxu1 }
 0x313   :  { %v805_v10 = vsel %vm3982_vm8, %v764_v8, -1e+09  ;;  %v364_v8 = vld [vmem:[%s3750_s24] sm:$0xff]  ;;  %s4252_s24 = sld [smem:[#allocation12_spill]] }
 0x314   :  { %v760_v11 = vpop.f32.mrf.mxu1  ;;  %v808_v12 = vsel %vm807_vm9, %v805_v10, -inf }
 0x315   :  { %v765_v2 = vmul.f32 0.17677669, %v760_v11  ;;  %809 = vmax.xlane.f32.xlu0 %v808_v12 }
 0x316   :  { %v3322_v14 = vpop.f32.mrf.mxu1 }
 0x317   :  { %v806_v15 = vsel %vm3990_vm10, %v765_v2, -1e+09 }
 0x318   :  { %v811_v16 = vsel %vm807_vm9, %v806_v15, -inf }
 0x319   :  { %812 = vmax.xlane.f32.xlu1 %v811_v16  ;;  %v3009_v16 = vld [vmem:[%s3760_s6] ss:$0 sm:$0xff]  ;;  %s4254_s6 = sld [smem:[#allocation15_spill]] }
 0x39e   :  { %v810_v17 = vpop.xlane.xlu0 %809 }
 0x39f   :  { %v814_v18 = vsub.f32 %v805_v10, %v810_v17 }
 0x3a1   :  { %v816_v19 = vmul.f32 1.442695, %v814_v18 }
 0x3a2   :  { %v813_v20 = vpop.xlane.xlu1 %812 }
 0x3a3   :  { %3572 = vpow2.f32 %v816_v19  ;;  %v815_v21 = vsub.f32 %v806_v15, %v813_v20 }
 0x3a5   :  { %v818_v22 = vmul.f32 1.442695, %v815_v21  ;;  %v3010_v21 = vld [vmem:[%s3765_s12] ss:$0 sm:$0xff]  ;;  %s4255_s12 = sld [smem:[#allocation13_spill]] }
 0x3a7   :  { %3574 = vpow2.f32 %v818_v22 }
 0x3b0   :  { %v3573_v23 = vpop.eup %3572 }
 0x3b1   :  { %v820_v26 = vsel %vm807_vm9, %v3573_v23, 0.0 }
 0x3b2   :  { %821 = vadd.xlane.f32.xlu0 %v820_v26 }
 0x3b4   :  { %v3575_v28 = vpop.eup %3574 }
 0x3b5   :  { %v823_v29 = vsel %vm807_vm9, %v3575_v28, 0.0 }
 0x3b6   :  { %824 = vadd.xlane.f32.xlu0 %v823_v29  ;;  %v374_v29 = vld [vmem:[%s3755_s30 + $0x30] sm:$0xff] }
 0x43b   :  { %v822_v31 = vpop.xlane.xlu0 %821 }
 0x43c   :  { %3576 = vrcp.f32 %v822_v31  ;;  %v372_v31 = vld [vmem:[%s3755_s30 + $0x20] sm:$0xff] }
 0x43f   :  { %v825_v32 = vpop.xlane.xlu0 %824 }
 0x440   :  { %3578 = vrcp.f32 %v825_v32  ;;  %v371_v32 = vld [vmem:[%s3755_s30 + $0x18] sm:$0xff] }
 0x449   :  { %v3577_v33 = vpop.eup %3576 }
 0x44a   :  { %v828_v34 = vmul.f32 %v3577_v33, %v3573_v23  ;;  %v370_v33 = vld [vmem:[%s3755_s30 + $0x10] sm:$0xff] }
 0x44c   :  { %3326 = vmatmul.mubr.msk.f32.vlgmr.msra.gmra.mxu0 %vm807_vm9, %v828_v34  ;;  %v369_v34 = vld [vmem:[%s3755_s30 + $0x8] sm:$0xff] }
 0x44d   :  { %v3579_v36 = vpop.eup %3578  ;;  %3334 = vmatpush3.msra.mxu0 %v363_v30  ;;  %v373_v30 = vld [vmem:[%s3755_s30 + $0x28] sm:$0xff] }
 0x44e   :  { %v829_v38 = vmul.f32 %v3579_v36, %v3575_v28  ;;  %3335 = vmatprep.subr.mxu0 %v362_v35  ;;  %v375_v28 = vld [vmem:[%s3755_s30 + $0x38] sm:$0xff] }
 0x44f   :  { %3336 = vmatpush3.msra.mxu0 %v362_v35  ;;  %v368_v35 = vld [vmem:[%s3755_s30] sm:$0xff]  ;;  %s4253_s30 = sld [smem:[#allocation14_spill]] }
 0x450   :  { %3331 = vmatmul.mubr.msk.f32.vlgmr.msra.gmra.mxu1 %vm807_vm9, %v829_v38  ;;  %3337 = vmatprep.subr.mxu0 %v361_v40 }
 0x451   :  { %3338 = vmatpush3.msra.mxu0 %v361_v40  ;;  %3345 = vmatpush3.msra.mxu1 %v367_v4 }
 0x452   :  { %3339 = vmatprep.subr.mxu0 %v360_v43  ;;  %3346 = vmatprep.subr.mxu1 %v366_v5 }
 0x453   :  { %3340 = vmatpush3.msra.mxu0 %v360_v43  ;;  %3347 = vmatpush3.msra.mxu1 %v366_v5 }
 0x454   :  { %3348 = vmatprep.subr.mxu1 %v365_v7  ;;  %3355 = vmatprep.subr.mxu0 %v375_v28 }
 0x455   :  { %3349 = vmatpush3.msra.mxu1 %v365_v7 }
 0x456   :  { %3350 = vmatprep.subr.mxu1 %v364_v8 }
 0x457   :  { %3351 = vmatpush3.msra.mxu1 %v364_v8 }
 0x458   :  { %3374 = vmatprep.subr.mxu1 %v3683_v37 }
 0x50c   :  { %v899_v44 = vpop.f32.mrf.mxu0 }
 0x50d   :  { %3341 = vmatprep.mubr.msk.f32.mxu0 %vm380_vm4, %v899_v44 }
 0x50e   :  { %v3327_v46 = vpop.f32.mrf.mxu0 }
 0x510   :  { %v972_v47 = vpop.f32.mrf.mxu1 }
 0x511   :  { %3342 = vmatmul.mubr.msk.f32.vlgmr.msra.gmra.mxu0 %vm380_vm4, %v972_v47 }
 0x512   :  { %v3332_v49 = vpop.f32.mrf.mxu1  ;;  %3356 = vmatpush3.msra.mxu0 %v375_v28  ;;  %v1596_v28 = vld [vmem:[%s4241_s5] sm:$0xf] }
 0x513   :  { %3357 = vmatprep.subr.mxu0 %v374_v29 }
 0x514   :  { %3358 = vmatpush3.msra.mxu0 %v374_v29 }
 0x515   :  { %3359 = vmatprep.subr.mxu0 %v373_v30 }
 0x516   :  { %3360 = vmatpush3.msra.mxu0 %v373_v30 }
 0x517   :  { %3361 = vmatprep.subr.mxu0 %v372_v31 }
 0x518   :  { %3362 = vmatpush3.msra.mxu0 %v372_v31 }
 0x519   :  { %3363 = vmatprep.subr.mxu0 %v371_v32 }
 0x51a   :  { %3364 = vmatpush3.msra.mxu0 %v371_v32 }
 0x51b   :  { %3365 = vmatprep.subr.mxu0 %v370_v33 }
 0x51c   :  { %3366 = vmatpush3.msra.mxu0 %v370_v33 }
 0x51d   :  { %3367 = vmatprep.subr.mxu0 %v369_v34 }
 0x51e   :  { %3368 = vmatpush3.msra.mxu0 %v369_v34 }
 0x51f   :  { %3369 = vmatprep.subr.mxu0 %v368_v35 }
 0x520   :  { %3370 = vmatpush3.msra.mxu0 %v368_v35 }
 0x521   :  { %3401 = vmatprep.subr.mxu0 %v3683_v37 }
 0x5d1   :  { %v3343_v50 = vpop.f32.mrf.mxu0 }
 0x5d2   :  { %v1058_v51 = vadd.f32 %v3343_v50, %v3930_v42 }
 0x5d3   :  { %v1048_v52 = vpop.f32.mrf.mxu0 }
 0x5d4   :  { %v1057_v53 = vadd.f32 %v1048_v52, %v3927_v41  ;;  %v1062_v54 = vsel %vm380_vm4, %v1058_v51, 0.0 }
 0x5d5   :  { %1063 = vadd.xlane.f32.xlu0 %v1062_v54 }
 0x5d6   :  { %v1059_v55 = vsel %vm380_vm4, %v1057_v53, 0.0 }
 0x5d7   :  { %1060 = vadd.xlane.f32.xlu1 %v1059_v55 }
 0x65e   :  { %v1064_v56 = vpop.xlane.xlu0 %1063 }
 0x65f   :  { %v1067_v58 = vmul.f32 0.03125, %v1064_v56 }
 0x660   :  { %v1061_v60 = vpop.xlane.xlu1 %1060 }
 0x661   :  { %v1069_v61 = vsub.f32 %v1058_v51, %v1067_v58  ;;  %v1066_v62 = vmul.f32 0.03125, %v1061_v60 }
 0x663   :  { %v1068_v63 = vsub.f32 %v1057_v53, %v1066_v62  ;;  %v1071_v42 = vmul.f32 %v1069_v61, %v1069_v61 }
 0x665   :  { %v1075_v1 = vsel %vm380_vm4, %v1071_v42, 0.0  ;;  %v1070_v41 = vmul.f32 %v1068_v63, %v1068_v63 }
 0x666   :  { %1076 = vadd.xlane.f32.xlu0 %v1075_v1 }
 0x667   :  { %v1072_v3 = vsel %vm380_vm4, %v1070_v41, 0.0 }
 0x668   :  { %1073 = vadd.xlane.f32.xlu1 %v1072_v3 }
 0x6ef   :  { %v1077_v9 = vpop.xlane.xlu0 %1076 }
 0x6f0   :  { %v1079_v10 = vmul.f32 0.03125, %v1077_v9 }
 0x6f1   :  { %v1074_v11 = vpop.xlane.xlu1 %1073 }
 0x6f2   :  { %v1081_v12 = vadd.f32 1e-05, %v1079_v10  ;;  %v1078_v2 = vmul.f32 0.03125, %v1074_v11 }
 0x6f4   :  { %3580 = vrsqrt.f32 %v1081_v12  ;;  %v1080_v14 = vadd.f32 1e-05, %v1078_v2 }
 0x6f6   :  { %3582 = vrsqrt.f32 %v1080_v14 }
 0x701   :  { %v3581_v15 = vpop.eup %3580 }
 0x702   :  { %v1085_v17 = vmul.f32 %v3581_v15, %v1069_v61 }
 0x703   :  { %v3583_v18 = vpop.eup %3582 }
 0x704   :  { %v1084_v19 = vmul.f32 %v3583_v18, %v1068_v63  ;;  %v1093_v20 = vmul.f32 %v3009_v16, %v1085_v17  ;;  %v1327_v17 = vld [vmem:[%s3710_s17] sm:$0x3]  ;;  %v1337_v18 = vsub.s32 1, %v3968_v57  ;;  %s4244_s17 = sld [smem:[#allocation21_spill]] }
 0x706   :  { %v1092_v22 = vmul.f32 %v3009_v16, %v1084_v19  ;;  %v1101_v26 = vadd.f32 %v3010_v21, %v1093_v20  ;;  %v1331_v19 = vrot.slane %v1327_v17, %v3977_v0  ;;  %v1338_v20 = vrot.slane %v1327_v17, %v1337_v18  ;;  %v1593_v17 = vld [vmem:[%s4246_s29 + $0x8] sm:$0xff]  ;;  %v1438_v18 = vld [vmem:[%s4245_s25] sm:$0xff] }
 0x708   :  { %v1100_v23 = vadd.f32 %v3010_v21, %v1092_v22  ;;  %v1361_v21 = vld [vmem:[%s4240_s0 + $0x18] sm:$0xff]  ;;  %v1360_v22 = vld [vmem:[%s4240_s0 + $0x10] sm:$0xff] }
 0x70a   :  { %3352 = vmatprep.mubr.msk.f32.mxu1 %vm380_vm4, %v1100_v23 }
 0x70b   :  { %3353 = vmatmul.mubr.msk.f32.vlgmr.msra.gmra.mxu1 %vm380_vm4, %v1101_v26 }
 0x70c   :  { %3382 = vmatprep.mubr.msk.f32.mxu1 %vm3684_vm5, %v3683_v37  ;;  %3375 = vmatpush3.msra.mxu1 %v1361_v21  ;;  %v1756_v21 = vld [vmem:[%s3855_s27] sm:$0xff] }
 0x70d   :  { %3376 = vmatprep.subr.mxu1 %v3683_v37 }
 0x70e   :  { %3377 = vmatpush3.msra.mxu1 %v1360_v22 }
 0x70f   :  { %3378 = vmatprep.subr.mxu1 %v3683_v37 }
 0x7cb   :  { %v3354_v36 = vpop.f32.mrf.mxu1 }
 0x7cc   :  { %v1184_v38 = vmul.f32 %v3354_v36, %v3354_v36 }
 0x7cd   :  { %v1174_v40 = vpop.f32.mrf.mxu1 }
 0x7ce   :  { %v1186_v43 = vmul.f32 %v3354_v36, %v1184_v38  ;;  %v1183_v44 = vmul.f32 %v1174_v40, %v1174_v40 }
 0x7d0   :  { %v1188_v46 = vmul.f32 0.044715, %v1186_v43  ;;  %v1185_v47 = vmul.f32 %v1183_v44, %v1174_v40  ;;  %v3016_v43 = vld [vmem:[%s4243_s13] ss:$0 sm:$0xff] }
 0x7d2   :  { %v1190_v49 = vadd.f32 %v3354_v36, %v1188_v46  ;;  %v1187_v50 = vmul.f32 0.044715, %v1185_v47 }
 0x7d4   :  { %v1192_v51 = vmul.f32 0.7978846, %v1190_v49  ;;  %v1189_v52 = vadd.f32 %v1187_v50, %v1174_v40 }
 0x7d6   :  { %3584 = vtanh.f32 %v1192_v51  ;;  %v1191_v53 = vmul.f32 0.7978846, %v1189_v52 }
 0x7d8   :  { %3586 = vtanh.f32 %v1191_v53 }
 0x7e3   :  { %v3585_v54 = vpop.eup %3584 }
 0x7e4   :  { %v1196_v55 = vadd.f32 1.0, %v3585_v54 }
 0x7e5   :  { %v3587_v56 = vpop.eup %3586 }
 0x7e6   :  { %v1195_v58 = vadd.f32 1.0, %v3587_v56  ;;  %v1198_v60 = vmul.f32 0.5, %v1196_v55 }
 0x7e8   :  { %v1197_v61 = vmul.f32 0.5, %v1195_v58  ;;  %v1200_v63 = vmul.f32 %v3354_v36, %v1198_v60  ;;  %v3015_v36 = vld [vmem:[%s4242_s9] ss:$0 sm:$0xff] }
 0x7ea   :  { %v1199_v62 = vmul.f32 %v1197_v61, %v1174_v40 }
 0x7ec   :  { %3371 = vmatprep.mubr.msk.f32.mxu0 %vm1201_vm11, %v1199_v62 }
 0x7ed   :  { %3372 = vmatmul.mubr.msk.f32.vlgmr.msra.gmra.mxu0 %vm1201_vm11, %v1200_v63 }
 0x7ee   :  { %3403 = vmatprep.mubr.msk.f32.mxu0 %vm3684_vm5, %v3683_v37  ;;  %3402 = vmatpush3.msk.msra.mxu0 %vm1447_vm12, %v1596_v28 }
 0x7ef   :  { %3406 = vmatprep.subr.mxu0 %v3683_v37 }
 0x8ad   :  { %v3373_v42 = vpop.f32.mrf.mxu0 }
 0x8ae   :  { %v1284_v1 = vadd.f32 %v3373_v42, %v1101_v26  ;;  %v1358_v26 = vld [vmem:[%s4240_s0] sm:$0xff] }
 0x8af   :  { %v1274_v41 = vpop.f32.mrf.mxu0 }
 0x8b0   :  { %v1283_v3 = vadd.f32 %v1274_v41, %v1100_v23  ;;  %v1288_v4 = vsel %vm380_vm4, %v1284_v1, 0.0  ;;  %v1359_v23 = vld [vmem:[%s4240_s0 + $0x8] sm:$0xff] }
 0x8b1   :  { %1289 = vadd.xlane.f32.xlu0 %v1288_v4  ;;  %3379 = vmatpush3.msra.mxu1 %v1359_v23 }
 0x8b2   :  { %v1285_v5 = vsel %vm380_vm4, %v1283_v3, 0.0  ;;  %3380 = vmatprep.subr.mxu1 %v3683_v37 }
 0x8b3   :  { %1286 = vadd.xlane.f32.xlu1 %v1285_v5  ;;  %3381 = vmatpush3.msra.mxu1 %v1358_v26 }
 0x8b4   :  { %3385 = vmatprep.subr.mxu1 %v3683_v37 }
 0x93a   :  { %v1290_v7 = vpop.xlane.xlu0 %1289 }
 0x93b   :  { %v1292_v8 = vmul.f32 0.03125, %v1290_v7 }
 0x93c   :  { %v1287_v9 = vpop.xlane.xlu1 %1286 }
 0x93d   :  { %v1294_v10 = vsub.f32 %v1284_v1, %v1292_v8  ;;  %v1291_v11 = vmul.f32 0.03125, %v1287_v9  ;;  %v1442_v8 = vld [vmem:[%s4244_s17] sm:$0xf] }
 0x93f   :  { %v1293_v12 = vsub.f32 %v1283_v3, %v1291_v11  ;;  %v1296_v2 = vmul.f32 %v1294_v10, %v1294_v10  ;;  %v1595_v11 = vld [vmem:[%s4246_s29 + $0x18] sm:$0xff] }
 0x941   :  { %v1300_v14 = vsel %vm380_vm4, %v1296_v2, 0.0  ;;  %v1295_v15 = vmul.f32 %v1293_v12, %v1293_v12  ;;  %v1440_v2 = vld [vmem:[%s4245_s25 + $0x10] sm:$0xff] }
 0x942   :  { %1301 = vadd.xlane.f32.xlu0 %v1300_v14  ;;  %v1594_v14 = vld [vmem:[%s4246_s29 + $0x10] sm:$0xff] }
 0x943   :  { %v1297_v16 = vsel %vm380_vm4, %v1295_v15, 0.0 }
 0x944   :  { %1298 = vadd.xlane.f32.xlu1 %v1297_v16  ;;  %v1439_v16 = vld [vmem:[%s4245_s25 + $0x8] sm:$0xff] }
 0x955   :  { %1333 = vbcast.lane.b32.xlu1 %v1331_v19, 256  ;;  %v1592_v19 = vld [vmem:[%s4246_s29] sm:$0xff] }
 0x958   :  { %1340 = vbcast.lane.b32.xlu0 %v1338_v20, 256  ;;  %v1757_v20 = vld [vmem:[%s3855_s27 + $0x8] sm:$0xff]  ;;  %s4256_s27 = sld [smem:[#allocation16_spill]] }
 0x9cb   :  { %v1302_v29 = vpop.xlane.xlu0 %1301 }
 0x9cc   :  { %v1304_v30 = vmul.f32 0.03125, %v1302_v29 }
 0x9cd   :  { %v1299_v31 = vpop.xlane.xlu1 %1298 }
 0x9ce   :  { %v1306_v32 = vadd.f32 1e-05, %v1304_v30  ;;  %v1303_v33 = vmul.f32 0.03125, %v1299_v31 }
 0x9cf   :  { %v1341_v47 = vpop.permute.xlu0 %1340 }
 0x9d0   :  { %3588 = vrsqrt.f32 %v1306_v32  ;;  %v1305_v34 = vadd.f32 1e-05, %v1303_v33 }
 0x9d1   :  { %v1334_v51 = vpop.permute.xlu1 %1333 }
 0x9d2   :  { %3590 = vrsqrt.f32 %v1305_v34 }
 0x9dd   :  { %v3589_v35 = vpop.eup %3588 }
 0x9de   :  { %v1310_v38 = vmul.f32 %v3589_v35, %v1294_v10  ;;  %v1441_v10 = vld [vmem:[%s4245_s25 + $0x18] sm:$0xff] }
 0x9df   :  { %v3591_v40 = vpop.eup %3590 }
 0x9e0   :  { %v1318_v44 = vmul.f32 %v3015_v36, %v1310_v38  ;;  %v1309_v46 = vmul.f32 %v3591_v40, %v1293_v12 }
 0x9e2   :  { %v1326_v49 = vadd.f32 %v3016_v43, %v1318_v44  ;;  %v1317_v50 = vmul.f32 %v3015_v36, %v1309_v46 }
 0x9e4   :  { %v1343_v52 = vmul.f32 %v1341_v47, %v1326_v49  ;;  %v1325_v53 = vadd.f32 %v3016_v43, %v1317_v50  ;;  %v1744_v47 = vld [vmem:[%s4247_s3] sm:$0x3] }
 0x9e6   :  { %v1351_v54 = vsel %vm380_vm4, %v1343_v52, 0.0  ;;  %v1342_v55 = vmul.f32 %v1334_v51, %v1325_v53 }
 0x9e7   :  { %v1352_v56 = vrot.slane %v1351_v54, 4 }
 0x9e8   :  { %v1344_v58 = vsel %vm380_vm4, %v1342_v55, 0.0 }
 0x9e9   :  { %v1353_v60 = vadd.f32 %v1352_v56, %v1351_v54  ;;  %v1345_v61 = vrot.slane %v1344_v58, 4  ;;  %v1870_v56 = vld [vmem:[%s4248_s8 + $0x18] sm:$0xff] }
 0x9eb   :  { %v1354_v62 = vrot.slane %v1353_v60, 2  ;;  %v1346_v63 = vadd.f32 %v1345_v61, %v1344_v58  ;;  %v1874_v58 = vld [vmem:[%s4249_s14 + $0x18] sm:$0xff]  ;;  %v1873_v61 = vld [vmem:[%s4249_s14 + $0x10] sm:$0xff] }
 0x9ed   :  { %v1355_v42 = vadd.f32 %v1354_v62, %v1353_v60  ;;  %v1347_v1 = vrot.slane %v1346_v63, 2  ;;  %v1869_v60 = vld [vmem:[%s4248_s8 + $0x10] sm:$0xff]  ;;  %v1868_v62 = vld [vmem:[%s4248_s8 + $0x8] sm:$0xff] }
 0x9ef   :  { %v1356_v41 = vrot.slane %v1355_v42, 1  ;;  %v1348_v3 = vadd.f32 %v1347_v1, %v1346_v63  ;;  %v1872_v63 = vld [vmem:[%s4249_s14 + $0x8] sm:$0xff]  ;;  %v1871_v1 = vld [vmem:[%s4249_s14] sm:$0xff] }
 0x9f1   :  { %v1349_v4 = vrot.slane %v1348_v3, 1  ;;  %v1357_v5 = vadd.f32 %v1356_v41, %v1355_v42  ;;  %v1867_v42 = vld [vmem:[%s4248_s8] sm:$0xff]  ;;  %v1878_v41 = vld [vmem:[%s4250_s19 + $0x18] sm:$0xff] }
 0x9f3   :  { %v1350_v7 = vadd.f32 %v1349_v4, %v1348_v3 }
 0x9f5   :  { %v1365_v9 = vsel %vm1364_vm13, %v1357_v5, %v1350_v7 }
 0x9f6   :  { %3383 = vmatmul.mubr.msk.f32.vlgmr.msra.gmra.mxu1 %vm380_vm4, %v1365_v9 }
 0x9f7   :  { %3386 = vmatpush3.msk.msra.mxu1 %vm1447_vm12, %v1442_v8  ;;  %3387 = vmatprep.mubr.msk.f32.mxu1 %vm3684_vm5, %v3683_v37 }
 0x9f8   :  { %3390 = vmatprep.subr.mxu1 %v3683_v37 }
 0xab6   :  { %v1434_v12 = vpop.f32.mrf.mxu1 }
 0xab7   :  { %3388 = vmatmul.mubr.msk.f32.vlgmr.msra.gmra.mxu1 %vm1443_vm14, %v1434_v12  ;;  %3404 = vmatmul.mubr.msk.f32.vlgmr.msra.gmra.mxu0 %vm1443_vm14, %v1434_v12 }
 0xab8   :  { %3391 = vmatpush3.msra.mxu1 %v1441_v10  ;;  %3407 = vmatpush3.msra.mxu0 %v1595_v11  ;;  %v3384_v15 = vpop.f32.mrf.mxu1 }
 0xab9   :  { %3392 = vmatprep.subr.mxu1 %v3683_v37  ;;  %3408 = vmatprep.subr.mxu0 %v3683_v37  ;;  %v1877_v15 = vld [vmem:[%s4250_s19 + $0x10] sm:$0xff] }
 0xaba   :  { %3393 = vmatpush3.msra.mxu1 %v1440_v2  ;;  %3409 = vmatpush3.msra.mxu0 %v1594_v14 }
 0xabb   :  { %3394 = vmatprep.subr.mxu1 %v3683_v37  ;;  %3410 = vmatprep.subr.mxu0 %v3683_v37 }
 0xabc   :  { %3395 = vmatpush3.msra.mxu1 %v1439_v16  ;;  %3411 = vmatpush3.msra.mxu0 %v1593_v17 }
 0xabd   :  { %3396 = vmatprep.subr.mxu1 %v3683_v37  ;;  %3412 = vmatprep.subr.mxu0 %v3683_v37 }
 0xabe   :  { %3397 = vmatpush3.msra.mxu1 %v1438_v18  ;;  %3398 = vmatprep.mubr.msk.f32.mxu1 %vm3684_vm5, %v3683_v37 }
 0xabf   :  { %3413 = vmatpush3.msra.mxu0 %v1592_v19  ;;  %3414 = vmatprep.mubr.msk.f32.mxu0 %vm3684_vm5, %v3683_v37 }
 0xac0   :  { %3399 = vmatmul.mubr.msk.f32.vlgmr.msra.gmra.mxu1 %vm380_vm4, %v1365_v9  ;;  %3415 = vmatmul.mubr.msk.f32.vlgmr.msra.gmra.mxu0 %vm380_vm4, %v1365_v9  ;;  %v346_v9 = vadd.f32 %v3955_v48, %v3924_v39  ;;  %v1876_v39 = vld [vmem:[%s4250_s19 + $0x8] sm:$0xff] }
 0xac1   :  { %3417 = vmatprep.subr.mxu1 %v3683_v37  ;;  %3421 = vmatprep.mubr.msk.f32.mxu1 %vm3684_vm5, %v3683_v37 }
 0xac2   :  { %3418 = vmatpush3.msra.mxu1 %v1757_v20  ;;  %3435 = vmatprep.subr.mxu0 %v1874_v58 }
 0xac3   :  { %3419 = vmatprep.subr.mxu1 %v3683_v37  ;;  %3436 = vmatpush3.msra.mxu0 %v1874_v58 }
 0xac4   :  { %3420 = vmatpush3.msra.mxu1 %v1756_v21  ;;  %3437 = vmatprep.subr.mxu0 %v1873_v61 }
 0xac5   :  { %3424 = vmatprep.subr.mxu1 %v1870_v56  ;;  %3438 = vmatpush3.msra.mxu0 %v1873_v61 }
 0xac6   :  { %3439 = vmatprep.subr.mxu0 %v1872_v63 }
 0xac7   :  { %3440 = vmatpush3.msra.mxu0 %v1872_v63 }
 0xac8   :  { %3441 = vmatprep.subr.mxu0 %v1871_v1 }
 0xac9   :  { %3442 = vmatpush3.msra.mxu0 %v1871_v1 }
 0xaca   :  { %3457 = vmatprep.subr.mxu0 %v3683_v37 }
 0xb77   :  { %v1517_v22 = vpop.f32.mrf.mxu1  ;;  %v1666_v23 = vpop.f32.mrf.mxu0 }
 0xb78   :  { %v1670_v29 = vmul.f32 2.0, %v1666_v23  ;;  %v1521_v40 = vmul.f32 2.0, %v1517_v22 }
 0xb79   :  { %v3389_v26 = vpop.f32.mrf.mxu1  ;;  %v3405_v28 = vpop.f32.mrf.mxu0 }
 0xb80   :  { %v1588_v30 = vpop.f32.mrf.mxu1  ;;  %v1737_v31 = vpop.f32.mrf.mxu0 }
 0xb81   :  { %v1738_v32 = vadd.f32 %v1737_v31, %v1670_v29  ;;  %v1589_v43 = vadd.f32 %v1588_v30, %v1521_v40 }
 0xb82   :  { %v3400_v33 = vpop.f32.mrf.mxu1  ;;  %v3416_v34 = vpop.f32.mrf.mxu0 }
 0xb83   :  { %v1741_v35 = vmul.f32 0.5, %v1738_v32  ;;  %v1748_v36 = vmul.f32 1.442695, %v1738_v32  ;;  %v1747_v44 = vmul.f32 %v1589_v43, %v1589_v43 }
 0xb85   :  { %v1742_v38 = vmul.f32 1.442695, %v1741_v35  ;;  %3592 = vpow2.f32 %v1748_v36 }
 0xb87   :  { %3594 = vpow2.f32 %v1742_v38 }
 0xb92   :  { %v3593_v46 = vpop.eup %3592 }
 0xb93   :  { %v1750_v49 = vadd.f32 %v3593_v46, %v1747_v44 }
 0xb94   :  { %v3595_v50 = vpop.eup %3594 }
 0xb95   :  { %v1751_v51 = vsub.f32 %v1750_v49, %v1738_v32  ;;  %v1745_v52 = vmul.f32 %v3595_v50, %v1744_v47 }
 0xb97   :  { %v3024_v53 = vadd.f32 -1.0, %v1751_v51  ;;  %v1746_v54 = vadd.f32 %v1745_v52, %v1589_v43 }
 0xb99   :  { %v1753_v55 = vmul.f32 0.5, %v3024_v53  ;;  %3422 = vmatmul.mubr.msk.f32.vlgmr.msra.gmra.mxu1 %vm1758_vm15, %v1746_v54 }
 0xb9a   :  { %3425 = vmatpush3.msra.mxu1 %v1870_v56 }
 0xb9b   :  { %1755 = vst.msk [vmem:[%s3865_s21] sm:$0x3] %vm1754_vm2, %v1753_v55  ;;  %3426 = vmatprep.subr.mxu1 %v1869_v60  ;;  %s4251_s21 = sld [smem:[#allocation11_spill]] }
 0xb9c   :  { %3427 = vmatpush3.msra.mxu1 %v1869_v60 }
 0xb9d   :  { %3428 = vmatprep.subr.mxu1 %v1868_v62 }
 0xb9e   :  { %3429 = vmatpush3.msra.mxu1 %v1868_v62 }
 0xb9f   :  { %3430 = vmatprep.subr.mxu1 %v1867_v42 }
 0xba0   :  { %3431 = vmatpush3.msra.mxu1 %v1867_v42 }
 0xba1   :  { %3446 = vmatprep.subr.mxu1 %v1878_v41  ;;  %v1882_v46 = vld [vmem:[%s4251_s21 + $0x18] sm:$0xff]  ;;  %v1881_v52 = vld [vmem:[%s4251_s21 + $0x10] sm:$0xff]  ;;  %v1880_v55 = vld [vmem:[%s4251_s21 + $0x8] sm:$0xff] }
 0xba2   :  { %v1879_v56 = vld [vmem:[%s4251_s21] sm:$0xff] }
 0xc59   :  { %v1828_v3 = vpop.f32.mrf.mxu1 }
 0xc5a   :  { %v1839_v4 = vrot.slane %v1828_v3, %v3971_v59 }
 0xc5b   :  { %v3423_v5 = vpop.f32.mrf.mxu1 }
 0xc5c   :  { %v1840_v7 = vcombine.high %v1839_v4, %v1839_v4  ;;  %v1847_v8 = vrot.slane %v1839_v4, %v3971_v59 }
 0xc5e   :  { %v1854_v10 = vrot.slane %v1840_v7, %v3971_v59  ;;  %v1858_v11 = vrot.slane %v1847_v8, %v3977_v0 }
 0xc60   :  { %v1862_v12 = vrot.slane %v1854_v10, %v3977_v0  ;;  %v4110_v2 = vadd.f32 %v1858_v11, %v346_v9 }
 0xc62   :  { %v4113_v14 = vadd.f32 %v1862_v12, %v3942_v45  ;;  %3432 = vmatprep.mubr.msk.f32.mxu1 %vm380_vm4, %v4110_v2  ;;  %3443 = vmatprep.mubr.msk.f32.mxu0 %vm380_vm4, %v4110_v2  ;;  %v1875_v45 = vld [vmem:[%s4250_s19] sm:$0xff] }
 0xc64   :  { %3433 = vmatmul.mubr.msk.f32.vlgmr.msra.gmra.mxu1 %vm380_vm4, %v4113_v14  ;;  %3444 = vmatmul.mubr.msk.f32.vlgmr.msra.gmra.mxu0 %vm380_vm4, %v4113_v14 }
 0xc65   :  { %3447 = vmatpush3.msra.mxu1 %v1878_v41  ;;  %3454 = vmatprep.mubr.msk.f32.mxu1 %vm380_vm4, %v4110_v2 }
 0xc66   :  { %3448 = vmatprep.subr.mxu1 %v1877_v15  ;;  %3459 = vmatprep.mubr.msk.f32.mxu0 %vm3684_vm5, %v3683_v37 }
 0xc67   :  { %3449 = vmatpush3.msra.mxu1 %v1877_v15 }
 0xc68   :  { %3450 = vmatprep.subr.mxu1 %v1876_v39 }
 0xc69   :  { %3451 = vmatpush3.msra.mxu1 %v1876_v39  ;;  %v1886_v39 = vld [vmem:[%s4252_s24 + $0x18] sm:$0xff] }
 0xc6a   :  { %3452 = vmatprep.subr.mxu1 %v1875_v45 }
 0xc6b   :  { %3453 = vmatpush3.msra.mxu1 %v1875_v45  ;;  %v1885_v45 = vld [vmem:[%s4252_s24 + $0x10] sm:$0xff] }
 0xc6c   :  { %3455 = vmatmul.mubr.msk.f32.vlgmr.msra.gmra.mxu1 %vm380_vm4, %v4113_v14  ;;  %3467 = vmatprep.subr.mxu1 %v3683_v37 }
 0xc6d   :  { %3469 = vmatprep.mubr.msk.f32.mxu1 %vm3684_vm5, %v3683_v37 }
 0xd24   :  { %v3445_v48 = vpop.f32.mrf.mxu0  ;;  %v3434_v59 = vpop.f32.mrf.mxu1 }
 0xd26   :  { %v2046_v0 = vpop.f32.mrf.mxu0  ;;  %v1971_v16 = vpop.f32.mrf.mxu1 }
 0xd27   :  { %3458 = vmatpush3.xpose.msk.msra.mxu0 %vm380_vm4, %v2046_v0 }
 0xd28   :  { %3462 = vmatprep.subr.mxu0 %v3683_v37 }
 0xd2a   :  { %3460 = vmatmul.mubr.msk.f32.vlgmr.msra.gmra.mxu0 %vm380_vm4, %v1971_v16 }
 0xd2b   :  { %3463 = vmatpush3.xpose.msk.msra.mxu0 %vm380_vm4, %v3445_v48  ;;  %3464 = vmatprep.mubr.msk.f32.mxu0 %vm3684_vm5, %v3683_v37  ;;  %v1884_v48 = vld [vmem:[%s4252_s24 + $0x8] sm:$0xff] }
 0xd2c   :  { %v3456_v17 = vpop.f32.mrf.mxu1  ;;  %3472 = vmatprep.subr.mxu0 %v3683_v37 }
 0xd2e   :  { %v2121_v18 = vpop.f32.mrf.mxu1  ;;  %3465 = vmatmul.mubr.msk.f32.vlgmr.msra.gmra.mxu0 %vm380_vm4, %v3434_v59  ;;  %v1883_v59 = vld [vmem:[%s4252_s24] sm:$0xff] }
 0xd2f   :  { %3468 = vmatpush3.msra.mxu1 %v2121_v18  ;;  %3473 = vmatpush3.msra.mxu0 %v3456_v17 }
 0xd30   :  { %3474 = vmatprep.mubr.msk.f32.mxu0 %vm3684_vm5, %v3683_v37  ;;  %3477 = vmatprep.subr.mxu1 %v1882_v46 }
 0xd31   :  { %3488 = vmatprep.subr.mxu0 %v1886_v39 }
 0xdea   :  { %v2202_v19 = vpop.f32.mrf.mxu0 }
 0xdeb   :  { %v2282_v20 = vmul.f32 0.17677669, %v2202_v19 }
 0xdec   :  { %v3461_v21 = vpop.f32.mrf.mxu0 }
 0xded   :  { %v2284_v22 = vsel %vm3982_vm8, %v2282_v20, -1e+09 }
 0xdee   :  { %v2278_v23 = vpop.f32.mrf.mxu0  ;;  %v2291_v26 = vsel %vm2288_vm3, %v2284_v22, -1e+09  ;;  %v3040_v22 = vld [vmem:[%s4253_s30] ss:$0 sm:$0xff] }
 0xdef   :  { %v2283_v28 = vmul.f32 0.17677669, %v2278_v23  ;;  %v2293_v29 = vsel %vm807_vm9, %v2291_v26, -inf }
 0xdf0   :  { %2294 = vmax.xlane.f32.xlu1 %v2293_v29  ;;  %v3466_v30 = vpop.f32.mrf.mxu0 }
 0xdf1   :  { %v2285_v31 = vsel %vm3990_vm10, %v2283_v28, -1e+09  ;;  %v3041_v30 = vld [vmem:[%s4254_s6] ss:$0 sm:$0xff] }
 0xdf2   :  { %v2292_v32 = vsel %vm2288_vm3, %v2285_v31, -1e+09 }
 0xdf3   :  { %v2296_v33 = vsel %vm807_vm9, %v2292_v32, -inf }
 0xdf4   :  { %2297 = vmax.xlane.f32.xlu0 %v2296_v33 }
 0xe79   :  { %v2295_v57 = vpop.xlane.xlu1 %2294 }
 0xe7a   :  { %v2299_v34 = vsub.f32 %v2291_v26, %v2295_v57  ;;  %v1894_v57 = vld [vmem:[%s4255_s12 + $0x38] sm:$0xff] }
 0xe7c   :  { %v2301_v35 = vmul.f32 1.442695, %v2299_v34  ;;  %v1893_v34 = vld [vmem:[%s4255_s12 + $0x30] sm:$0xff] }
 0xe7d   :  { %v2298_v6 = vpop.xlane.xlu0 %2297 }
 0xe7e   :  { %3596 = vpow2.f32 %v2301_v35  ;;  %v2300_v36 = vsub.f32 %v2292_v32, %v2298_v6  ;;  %v1892_v35 = vld [vmem:[%s4255_s12 + $0x28] sm:$0xff]  ;;  %v1891_v6 = vld [vmem:[%s4255_s12 + $0x20] sm:$0xff] }
 0xe80   :  { %v2303_v38 = vmul.f32 1.442695, %v2300_v36  ;;  %v1890_v36 = vld [vmem:[%s4255_s12 + $0x18] sm:$0xff] }
 0xe82   :  { %3598 = vpow2.f32 %v2303_v38  ;;  %v1889_v38 = vld [vmem:[%s4255_s12 + $0x10] sm:$0xff] }
 0xe8b   :  { %v3597_v40 = vpop.eup %3596 }
 0xe8c   :  { %v2305_v43 = vsel %vm807_vm9, %v3597_v40, 0.0 }
 0xe8d   :  { %2306 = vadd.xlane.f32.xlu1 %v2305_v43  ;;  %v1887_v43 = vld [vmem:[%s4255_s12] sm:$0xff] }
 0xe8f   :  { %v3599_v13 = vpop.eup %3598 }
 0xe90   :  { %v2308_v44 = vsel %vm807_vm9, %v3599_v13, 0.0 }
 0xe91   :  { %2309 = vadd.xlane.f32.xlu0 %v2308_v44 }
 0xf16   :  { %v2307_v47 = vpop.xlane.xlu1 %2306 }
 0xf17   :  { %3600 = vrcp.f32 %v2307_v47 }
 0xf1a   :  { %v2310_v49 = vpop.xlane.xlu0 %2309 }
 0xf1b   :  { %3602 = vrcp.f32 %v2310_v49 }
 0xf24   :  { %v3601_v50 = vpop.eup %3600 }
 0xf25   :  { %v2313_v51 = vmul.f32 %v3601_v50, %v3597_v40  ;;  %v1888_v40 = vld [vmem:[%s4255_s12 + $0x8] sm:$0xff] }
 0xf27   :  { %3470 = vmatmul.mubr.msk.f32.vlgmr.msra.gmra.mxu1 %vm807_vm9, %v2313_v51 }
 0xf28   :  { %v3603_v53 = vpop.eup %3602  ;;  %3478 = vmatpush3.msra.mxu1 %v1882_v46 }
 0xf29   :  { %v2314_v54 = vmul.f32 %v3603_v53, %v3599_v13  ;;  %3479 = vmatprep.subr.mxu1 %v1881_v52 }
 0xf2a   :  { %3480 = vmatpush3.msra.mxu1 %v1881_v52 }
 0xf2b   :  { %3475 = vmatmul.mubr.msk.f32.vlgmr.msra.gmra.mxu0 %vm807_vm9, %v2314_v54  ;;  %3481 = vmatprep.subr.mxu1 %v1880_v55 }
 0xf2c   :  { %3482 = vmatpush3.msra.mxu1 %v1880_v55  ;;  %3489 = vmatpush3.msra.mxu0 %v1886_v39 }
 0xf2d   :  { %3483 = vmatprep.subr.mxu1 %v1879_v56  ;;  %3490 = vmatprep.subr.mxu0 %v1885_v45 }
 0xf2e   :  { %3484 = vmatpush3.msra.mxu1 %v1879_v56  ;;  %3491 = vmatpush3.msra.mxu0 %v1885_v45 }
 0xf2f   :  { %3492 = vmatprep.subr.mxu0 %v1884_v48  ;;  %3499 = vmatprep.subr.mxu1 %v1894_v57 }
 0xf30   :  { %3493 = vmatpush3.msra.mxu0 %v1884_v48 }
 0xf31   :  { %3494 = vmatprep.subr.mxu0 %v1883_v59 }
 0xf32   :  { %3495 = vmatpush3.msra.mxu0 %v1883_v59 }
 0xfe7   :  { %v2384_v58 = vpop.f32.mrf.mxu1 }
 0xfe8   :  { %3485 = vmatprep.mubr.msk.f32.mxu1 %vm380_vm4, %v2384_v58 }
 0xfe9   :  { %v3471_v60 = vpop.f32.mrf.mxu1 }
 0xfeb   :  { %v2457_v61 = vpop.f32.mrf.mxu0 }
 0xfec   :  { %3486 = vmatmul.mubr.msk.f32.vlgmr.msra.gmra.mxu1 %vm380_vm4, %v2457_v61 }
 0xfed   :  { %v3476_v62 = vpop.f32.mrf.mxu0  ;;  %3500 = vmatpush3.msra.mxu1 %v1894_v57  ;;  %v3047_v57 = vld [vmem:[%s4257_s22] ss:$0 sm:$0xff] }
 0xfee   :  { %3501 = vmatprep.subr.mxu1 %v1893_v34 }
 0xfef   :  { %3502 = vmatpush3.msra.mxu1 %v1893_v34 }
 0xff0   :  { %3503 = vmatprep.subr.mxu1 %v1892_v35 }
 0xff1   :  { %3504 = vmatpush3.msra.mxu1 %v1892_v35 }
 0xff2   :  { %3505 = vmatprep.subr.mxu1 %v1891_v6 }
 0xff3   :  { %3506 = vmatpush3.msra.mxu1 %v1891_v6 }
 0xff4   :  { %3507 = vmatprep.subr.mxu1 %v1890_v36 }
 0xff5   :  { %3508 = vmatpush3.msra.mxu1 %v1890_v36 }
 0xff6   :  { %3509 = vmatprep.subr.mxu1 %v1889_v38 }
 0xff7   :  { %3510 = vmatpush3.msra.mxu1 %v1889_v38 }
 0xff8   :  { %3511 = vmatprep.subr.mxu1 %v1888_v40 }
 0xff9   :  { %3512 = vmatpush3.msra.mxu1 %v1888_v40 }
 0xffa   :  { %3513 = vmatprep.subr.mxu1 %v1887_v43 }
 0xffb   :  { %3514 = vmatpush3.msra.mxu1 %v1887_v43 }
0x10ac   :  { %v3487_v63 = vpop.f32.mrf.mxu1 }
0x10ad   :  { %v2543_v42 = vadd.f32 %v3487_v63, %v4113_v14 }
0x10ae   :  { %v2533_v1 = vpop.f32.mrf.mxu1 }
0x10af   :  { %v2542_v41 = vadd.f32 %v2533_v1, %v4110_v2  ;;  %v2547_v3 = vsel %vm380_vm4, %v2543_v42, 0.0 }
0x10b0   :  { %2548 = vadd.xlane.f32.xlu0 %v2547_v3 }
0x10b1   :  { %v2544_v4 = vsel %vm380_vm4, %v2542_v41, 0.0 }
0x10b2   :  { %2545 = vadd.xlane.f32.xlu1 %v2544_v4 }
0x1139   :  { %v2549_v5 = vpop.xlane.xlu0 %2548 }
0x113a   :  { %v2551_v7 = vmul.f32 0.03125, %v2549_v5 }
0x113b   :  { %v2546_v8 = vpop.xlane.xlu1 %2545 }
0x113c   :  { %v2553_v9 = vsub.f32 %v2543_v42, %v2551_v7  ;;  %v2550_v10 = vmul.f32 0.03125, %v2546_v8 }
0x113e   :  { %v2552_v11 = vsub.f32 %v2542_v41, %v2550_v10  ;;  %v2555_v12 = vmul.f32 %v2553_v9, %v2553_v9 }
0x1140   :  { %v2559_v14 = vsel %vm380_vm4, %v2555_v12, 0.0  ;;  %v2554_v2 = vmul.f32 %v2552_v11, %v2552_v11 }
0x1141   :  { %2560 = vadd.xlane.f32.xlu0 %v2559_v14 }
0x1142   :  { %v2556_v15 = vsel %vm380_vm4, %v2554_v2, 0.0 }
0x1143   :  { %2557 = vadd.xlane.f32.xlu1 %v2556_v15 }
0x11ca   :  { %v2561_v0 = vpop.xlane.xlu0 %2560 }
0x11cb   :  { %v2563_v16 = vmul.f32 0.03125, %v2561_v0  ;;  %v2813_v0 = vld [vmem:[%s3860_s4 + $0x18] sm:$0xff] }
0x11cc   :  { %v2558_v17 = vpop.xlane.xlu1 %2557  ;;  %3518 = vmatprep.subr.mxu0 %v2813_v0 }
0x11cd   :  { %v2565_v18 = vadd.f32 1e-05, %v2563_v16  ;;  %v2562_v19 = vmul.f32 0.03125, %v2558_v17  ;;  %v2812_v16 = vld [vmem:[%s3860_s4 + $0x10] sm:$0xff]  ;;  %v2811_v17 = vld [vmem:[%s3860_s4 + $0x8] sm:$0xff] }
0x11cf   :  { %3604 = vrsqrt.f32 %v2565_v18  ;;  %v2564_v20 = vadd.f32 1e-05, %v2562_v19  ;;  %v2810_v18 = vld [vmem:[%s3860_s4] sm:$0xff]  ;;  %s3686_s4 = smov [#allocation2]  }
0x11d0   :  { %s2941_s23 = sshll.u32 %s3686_s4, 4  ;;  %s2942_s23 = int_to_ptr.vmem [resolvable:$true] %s2941_s23 }
0x11d1   :  { %3606 = vrsqrt.f32 %v2564_v20  ;;  %s3624_s26 = scalar_lea.vmem %s2942_s23, 16  ;;  %s3628_s28 = scalar_lea.vmem %s2942_s23, 32 }
0x11d2   :  { %p3625_p0 = scmp.ne.s32.totalorder %s2942_s23, %s3624_s26  ;;  %p3629_p1 = scmp.lt.s32.totalorder %s2942_s23, %s2942_s23 }
0x11d3   :  { %p3630_p2 = scmp.lt.s32.totalorder %s3628_s28, %s3624_s26 }
0x11d5   :  { %p3631_p3 = por %p3630_p2, %p3629_p1 }
0x11d7   :  { %p3632_p4 = pnand %p3631_p3, %p3625_p0 }
0x11dc   :  { %v3605_v21 = vpop.eup %3604 }
0x11dd   :  { %v2569_v23 = vmul.f32 %v3605_v21, %v2553_v9 }
0x11de   :  { %v3607_v26 = vpop.eup %3606 }
0x11df   :  { %v2568_v28 = vmul.f32 %v3607_v26, %v2552_v11  ;;  %v2577_v29 = vmul.f32 %v3040_v22, %v2569_v23 }
0x11e1   :  { %v2576_v31 = vmul.f32 %v3040_v22, %v2568_v28  ;;  %v2585_v33 = vadd.f32 %v3041_v30, %v2577_v29  ;;  %v3046_v29 = vld [vmem:[%s4256_s27] ss:$0 sm:$0xff] }
0x11e3   :  { %v2584_v32 = vadd.f32 %v3041_v30, %v2576_v31 }
0x11e5   :  { %3496 = vmatprep.mubr.msk.f32.mxu0 %vm380_vm4, %v2584_v32 }
0x11e6   :  { %3497 = vmatmul.mubr.msk.f32.vlgmr.msra.gmra.mxu0 %vm380_vm4, %v2585_v33 }
0x11e7   :  { %3519 = vmatpush3.msra.mxu0 %v2813_v0 }
0x11e8   :  { %3520 = vmatprep.subr.mxu0 %v2812_v16 }
0x11e9   :  { %3521 = vmatpush3.msra.mxu0 %v2812_v16 }
0x11ea   :  { %3522 = vmatprep.subr.mxu0 %v2811_v17 }
0x11eb   :  { %3523 = vmatpush3.msra.mxu0 %v2811_v17 }
0x11ec   :  { %3524 = vmatprep.subr.mxu0 %v2810_v18 }
0x11ed   :  { %3525 = vmatpush3.msra.mxu0 %v2810_v18 }
0x12a6   :  { %v3498_v13 = vpop.f32.mrf.mxu0 }
0x12a7   :  { %v2668_v44 = vmul.f32 %v3498_v13, %v3498_v13 }
0x12a8   :  { %v2658_v46 = vpop.f32.mrf.mxu0 }
0x12a9   :  { %v2670_v47 = vmul.f32 %v3498_v13, %v2668_v44  ;;  %v2667_v49 = vmul.f32 %v2658_v46, %v2658_v46 }
0x12ab   :  { %v2672_v50 = vmul.f32 0.044715, %v2670_v47  ;;  %v2669_v51 = vmul.f32 %v2667_v49, %v2658_v46 }
0x12ad   :  { %v2674_v52 = vadd.f32 %v3498_v13, %v2672_v50  ;;  %v2671_v53 = vmul.f32 0.044715, %v2669_v51  ;;  %v2987_v51 = vsel %vm175_vm1, 1.0, %v3683_v37 }
0x12af   :  { %v2676_v54 = vmul.f32 0.7978846, %v2674_v52  ;;  %v2673_v55 = vadd.f32 %v2671_v53, %v2658_v46  ;;  %v2986_v53 = vsel %vm174_vm0, 1.0, %v3683_v37  ;;  %vm2931_vm0 = vcmask 0  }
0x12b1   :  { %3608 = vtanh.f32 %v2676_v54  ;;  %v2675_v56 = vmul.f32 0.7978846, %v2673_v55 }
0x12b3   :  { %3610 = vtanh.f32 %v2675_v56 }
0x12be   :  { %v3609_v58 = vpop.eup %3608 }
0x12bf   :  { %v2680_v60 = vadd.f32 1.0, %v3609_v58 }
0x12c0   :  { %v3611_v61 = vpop.eup %3610 }
0x12c1   :  { %v2679_v62 = vadd.f32 1.0, %v3611_v61  ;;  %v2682_v63 = vmul.f32 0.5, %v2680_v60 }
0x12c3   :  { %v2681_v42 = vmul.f32 0.5, %v2679_v62  ;;  %v2684_v41 = vmul.f32 %v3498_v13, %v2682_v63 }
0x12c5   :  { %v2683_v1 = vmul.f32 %v2681_v42, %v2658_v46 }
0x12c7   :  { %3515 = vmatprep.mubr.msk.f32.mxu1 %vm1201_vm11, %v2683_v1 }
0x12c8   :  { %3516 = vmatmul.mubr.msk.f32.vlgmr.msra.gmra.mxu1 %vm1201_vm11, %v2684_v41 }
0x1388   :  { %v3517_v3 = vpop.f32.mrf.mxu1 }
0x1389   :  { %v2767_v4 = vadd.f32 %v3517_v3, %v2585_v33 }
0x138a   :  { %v2757_v5 = vpop.f32.mrf.mxu1 }
0x138b   :  { %v2766_v7 = vadd.f32 %v2757_v5, %v2584_v32  ;;  %v2771_v8 = vsel %vm380_vm4, %v2767_v4, 0.0 }
0x138c   :  { %2772 = vadd.xlane.f32.xlu0 %v2771_v8 }
0x138d   :  { %v2768_v9 = vsel %vm380_vm4, %v2766_v7, 0.0 }
0x138e   :  { %2769 = vadd.xlane.f32.xlu1 %v2768_v9 }
0x1415   :  { %v2773_v10 = vpop.xlane.xlu0 %2772 }
0x1416   :  { %v2775_v11 = vmul.f32 0.03125, %v2773_v10 }
0x1417   :  { %v2770_v12 = vpop.xlane.xlu1 %2769 }
0x1418   :  { %v2777_v14 = vsub.f32 %v2767_v4, %v2775_v11  ;;  %v2774_v2 = vmul.f32 0.03125, %v2770_v12 }
0x141a   :  { %v2776_v15 = vsub.f32 %v2766_v7, %v2774_v2  ;;  %v2779_v39 = vmul.f32 %v2777_v14, %v2777_v14 }
0x141c   :  { %v2783_v45 = vsel %vm380_vm4, %v2779_v39, 0.0  ;;  %v2778_v48 = vmul.f32 %v2776_v15, %v2776_v15 }
0x141d   :  { %2784 = vadd.xlane.f32.xlu0 %v2783_v45 }
0x141e   :  { %v2780_v59 = vsel %vm380_vm4, %v2778_v48, 0.0 }
0x141f   :  { %2781 = vadd.xlane.f32.xlu1 %v2780_v59 }
0x14a6   :  { %v2785_v19 = vpop.xlane.xlu0 %2784 }
0x14a7   :  { %v2787_v20 = vmul.f32 0.03125, %v2785_v19 }
0x14a8   :  { %v2782_v21 = vpop.xlane.xlu1 %2781 }
0x14a9   :  { %v2789_v22 = vadd.f32 1e-05, %v2787_v20  ;;  %v2786_v23 = vmul.f32 0.03125, %v2782_v21 }
0x14ab   :  { %3612 = vrsqrt.f32 %v2789_v22  ;;  %v2788_v26 = vadd.f32 1e-05, %v2786_v23 }
0x14ad   :  { %3614 = vrsqrt.f32 %v2788_v26 }
0x14b8   :  { %v3613_v28 = vpop.eup %3612 }
0x14b9   :  { %v2793_v30 = vmul.f32 %v3613_v28, %v2777_v14 }
0x14ba   :  { %v3615_v31 = vpop.eup %3614 }
0x14bb   :  { %v2792_v32 = vmul.f32 %v3615_v31, %v2776_v15  ;;  %v2801_v33 = vmul.f32 %v3046_v29, %v2793_v30 }
0x14bd   :  { %v2800_v34 = vmul.f32 %v3046_v29, %v2792_v32  ;;  %v2809_v6 = vadd.f32 %v3047_v57, %v2801_v33 }
0x14bf   :  { %v2808_v35 = vadd.f32 %v3047_v57, %v2800_v34 }
0x14c1   :  { %3526 = vmatprep.mubr.msk.f32.mxu0 %vm380_vm4, %v2808_v35 }
0x14c2   :  { %3527 = vmatmul.mubr.msk.f32.vlgmr.msra.gmra.mxu0 %vm380_vm4, %v2809_v6 }
0x1582   :  { %v3528_v36 = vpop.f32.mrf.mxu0 }
0x1583   :  { %2897 = vmax.xlane.f32.xlu0 %v3528_v36  ;;  %v2916_v52 = vmul.f32 %v3528_v36, %v2987_v51 }
0x1584   :  { %v2886_v38 = vpop.f32.mrf.mxu0 }
0x1585   :  { %2895 = vmax.xlane.f32.xlu1 %v2886_v38  ;;  %v2915_v54 = vmul.f32 %v2986_v53, %v2886_v38 }
0x160c   :  { %v2898_v40 = vpop.xlane.xlu0 %2897 }
0x160d   :  { %v2900_v43 = vsub.f32 %v3528_v36, %v2898_v40 }
0x160e   :  { %v2896_v13 = vpop.xlane.xlu1 %2895 }
0x160f   :  { %v2903_v44 = vmul.f32 1.442695, %v2900_v43  ;;  %v2899_v46 = vsub.f32 %v2886_v38, %v2896_v13 }
0x1611   :  { %3616 = vpow2.f32 %v2903_v44  ;;  %v2901_v47 = vmul.f32 1.442695, %v2899_v46 }
0x1613   :  { %3618 = vpow2.f32 %v2901_v47 }
0x161e   :  { %v3617_v49 = vpop.eup %3616 }
0x161f   :  { %2907 = vadd.xlane.f32.xlu0 %v3617_v49 }
0x1620   :  { %v3619_v50 = vpop.eup %3618 }
0x1621   :  { %2905 = vadd.xlane.f32.xlu1 %v3619_v50 }
0x1623   :  { %2919 = vadd.xlane.f32.xlu0 %v2916_v52 }
0x1625   :  { %2917 = vadd.xlane.f32.xlu1 %v2915_v54 }
0x16a8   :  { %v2908_v55 = vpop.xlane.xlu0 %2907 }
0x16a9   :  { %3620 = vlog2.f32 %v2908_v55 }
0x16aa   :  { %v2906_v56 = vpop.xlane.xlu1 %2905 }
0x16ab   :  { %3622 = vlog2.f32 %v2906_v56 }
0x16ac   :  { %v2920_v42 = vpop.xlane.xlu0 %2919 }
0x16ae   :  { %v2918_v1 = vpop.xlane.xlu1 %2917 }
0x16b6   :  { %v3621_v58 = vpop.eup %3620 }
0x16b7   :  { %v2912_v60 = vmul.f32 0.6931472, %v3621_v58 }
0x16b8   :  { %v3623_v61 = vpop.eup %3622 }
0x16b9   :  { %v2910_v62 = vmul.f32 0.6931472, %v3623_v61  ;;  %v2914_v27 = vadd.f32 %v2912_v60, %v2898_v40 }
0x16bb   :  { %v2913_v63 = vadd.f32 %v2910_v62, %v2896_v13  ;;  %v2922_v41 = vsub.f32 %v2914_v27, %v2920_v42 }
0x16bd   :  { %v2921_v3 = vsub.f32 %v2913_v63, %v2918_v1 }
0x16bf   :  { %v2923_v4 = vadd.f32 %v2922_v41, %v2921_v3 }
0x16c1   :  { %v2924_v24 = vrot.slane %v2923_v4, 4 }
0x16c3   :  { %v2925_v25 = vadd.f32 %v2924_v24, %v2923_v4 }
0x16c5   :  { %v2926_v37 = vrot.slane %v2925_v25, 2 }
0x16c7   :  { %v2927_v5 = vadd.f32 %v2926_v37, %v2925_v25 }
0x16c9   :  { %v2928_v7 = vrot.slane %v2927_v5, 1 }
0x16cb   :  { %v2929_v8 = vadd.f32 %v2928_v7, %v2927_v5 }
0x16cd   :  { %v2930_v9 = vmul.f32 0.0625, %v2929_v8 }
0x16cf   :  { %2932 = vst.msk [vmem:[#allocation2] sm:$0x1] %vm2931_vm0, %v2930_v9 }
0x16d0   :  { %3635 = shalt.err (!%p3632_p4)
}
0x16d1   :  { %2944 = dma.vmem_to_hbm [thread:$0]  %s2942_s23, 16, %s3870_s20, [#allocation3]  }
0x16d2   :  { %3644 = dma.done.wait [#allocation3], 16  }
0x16d3   :  { %3645 = vsyncadd [#allocation3], 4294967280 }
0x16d4   :  { %2950 = vsyncpa [#allocation3], 1 }

</bundles_post_ra>
